<compile_context>
chip_gen: v7x
topology: tpu7x:2x2x1
jax: 0.10.0
libtpu: 0.0.40
codegen_flags: <defaults>
</compile_context>

<pallas_src>
import jax
import jax.numpy as jnp
from jax import lax
from jax.experimental import pallas as pl
from jax.experimental.pallas import tpu as pltpu


# ----------------------------- config (scaled-down) -------------------------
BATCH_SIZE = 4          # original 16
MAX_LEN = 6
DICT_SIZE = 32
EMBED_SIZE = 16         # original 200
HIDDEN_SIZE = 8         # original 10
LINERA_SIZE = 16        # TODO(synk): original 10; must equal EMBED_SIZE for the
                        # decoder concat along the sequence axis to be well defined.
OUTPUT_SIZE = 32        # TODO(synk): original 100; set == DICT_SIZE so that the
                        # decoder argmax produces valid embedding indices.

assert LINERA_SIZE == EMBED_SIZE, "decoder concat needs LINERA_SIZE == EMBED_SIZE"
assert OUTPUT_SIZE <= DICT_SIZE, "decoder argmax feedback must be a valid token id"


# ----------------------------- fused kernel ----------------------------------
def vae_kernel(tok_ref, eps_ref, table_ref, wih_ref, whh_ref, b_ref,
               whead_ref, bhead_ref, wout_ref, bout_ref,
               pred_ref, mu_ref, logvar_ref, h_buf):
    """Whole VAE forward in one invocation (no grid).

    tok_ref : (L*B, 1) int32, time-major flattened token ids (row = t*B + b)
    eps_ref : (L*B, LIN) f32 reparameterization noise (time-major)
    pred_ref: (L, B-1, OUT) f32, pred_ref[0] == 0 (matches predicts[idx]=... loop)
    mu_ref / logvar_ref: (L*B, LIN) f32, time-major, full batch
    h_buf   : (L*B, H) VMEM scratch holding all encoder hidden states
    """
    L, B, H = MAX_LEN, BATCH_SIZE, HIDDEN_SIZE
    b_enc = B - 1
    V = table_ref.shape[0]
    lin = eps_ref.shape[1]
    out_dim = wout_ref.shape[1]
    f32 = jnp.float32

    table = table_ref[...]
    wih = wih_ref[...]
    whh = whh_ref[...]
    bias = b_ref[...]
    wout = wout_ref[...]
    bout = bout_ref[...]

    def embed(tok):  # tok: (n, 1) int32 -> (n, E) f32  (one-hot matmul lookup)
        n = tok.shape[0]
        onehot = (tok == lax.broadcasted_iota(jnp.int32, (n, V), 1)).astype(f32)
        return jnp.dot(onehot, table, preferred_element_type=f32)

    def gate(g, k):
        return g[:, k * H:(k + 1) * H]

    # ---------------- encoder ----------------
    # TODO(synk): nn.Dropout(0.5) treated as identity (eval mode).
    tok_all = tok_ref[...]                                       # (L*B, 1)
    x_emb = embed(tok_all)                                       # (L*B, E)
    # Hoisted input projection: one MXU push for all timesteps.
    gates_x = jnp.dot(x_emb, wih, preferred_element_type=f32) + bias   # (L*B, 4H)

    h = jnp.zeros((B, H), f32)
    c = jnp.zeros((B, H), f32)
    for t in range(L):                                           # static unrolled
        g = gates_x[t * B:(t + 1) * B, :] + jnp.dot(h, whh, preferred_element_type=f32)
        i_g = jax.nn.sigmoid(gate(g, 0))
        f_g = jax.nn.sigmoid(gate(g, 1))
        g_g = jnp.tanh(gate(g, 2))
        o_g = jax.nn.sigmoid(gate(g, 3))
        c = f_g * c + i_g * g_g
        h = o_g * jnp.tanh(c)
        h_buf[pl.ds(t * B, B), :] = h

    # Fused mu|logvar head: single (L*B, H) @ (H, 2*LIN) matmul.
    h_all = h_buf[...]                                           # (L*B, H)
    head = jnp.dot(h_all, whead_ref[...], preferred_element_type=f32) + bhead_ref[...]
    mu = head[:, :lin]
    pre = head[:, lin:2 * lin]
    # numerically stable softplus
    logvar = jnp.maximum(pre, 0.0) + jnp.log1p(jnp.exp(-jnp.abs(pre)))
    std = 0.5 * jnp.exp(logvar)          # faithful to original reparameter()
    z = eps_ref[...] * std + mu                                  # (L*B, LIN)
    mu_ref[...] = mu
    logvar_ref[...] = logvar

    # ---------------- autoregressive decoder ----------------
    # z per step = latent of the last encoder timestep, batches 0..B-2.
    z_dec = z[(L - 1) * B:(L - 1) * B + b_enc, :]                # (B-1, LIN == E)
    # Loop-invariant z projection, hoisted out of the decode loop.
    gates_z = jnp.dot(z_dec, wih, preferred_element_type=f32) + bias   # (B-1, 4H)

    tok = tok_all[0:b_enc, :]                                    # x[:-1, 0]
    pred_ref[0] = jnp.zeros((b_enc, out_dim), f32)               # predicts[0] stays 0
    for t in range(L - 1):                                       # static unrolled
        x_emb_d = embed(tok)                                     # (B-1, E)
        # Cell 1 over embed(token): h0 = c0 = 0, so the h@Whh term vanishes.
        g1 = jnp.dot(x_emb_d, wih, preferred_element_type=f32) + bias
        i1 = jax.nn.sigmoid(gate(g1, 0))
        g1g = jnp.tanh(gate(g1, 2))
        o1 = jax.nn.sigmoid(gate(g1, 3))
        c1 = i1 * g1g
        h1 = o1 * jnp.tanh(c1)

        # Cell 2 over z (projection hoisted above).
        g2 = gates_z + jnp.dot(h1, whh, preferred_element_type=f32)
        i2 = jax.nn.sigmoid(gate(g2, 0))
        f2 = jax.nn.sigmoid(gate(g2, 1))
        g2g = jnp.tanh(gate(g2, 2))
        o2 = jax.nn.sigmoid(gate(g2, 3))
        c2 = f2 * c1 + i2 * g2g
        h2 = o2 * jnp.tanh(c2)

        predict = jnp.dot(h2, wout, preferred_element_type=f32) + bout   # (B-1, OUT)
        pred_ref[t + 1] = predict

        # argmax (first maximal index) -> next input token
        m = jnp.max(predict, axis=1, keepdims=True)
        idx = lax.broadcasted_iota(jnp.int32, predict.shape, 1)
        cand = jnp.where(predict == m, idx, out_dim)
        tok = jnp.min(cand, axis=1, keepdims=True).astype(jnp.int32)


# ----------------------------- wrapper ----------------------------------------
@jax.jit
def vae_forward(params, x, eps):
    """x: (B, L) int32 token ids; eps: (L, B, LIN) noise.
    Returns (predicts, mu, logvar) with predicts time-major (L, B-1, OUT)."""
    batch, seq_len = x.shape
    b_enc = batch - 1
    n = seq_len * batch

    tok_tm = jnp.transpose(x, (1, 0)).reshape(n, 1).astype(jnp.int32)   # time-major
    eps_flat = eps.reshape(n, LINERA_SIZE).astype(jnp.float32)

    predicts, mu_flat, logvar_flat = pl.pallas_call(
        vae_kernel,
        out_shape=(
            jax.ShapeDtypeStruct((seq_len, b_enc, OUTPUT_SIZE), jnp.float32),
            jax.ShapeDtypeStruct((n, LINERA_SIZE), jnp.float32),
            jax.ShapeDtypeStruct((n, LINERA_SIZE), jnp.float32),
        ),
        scratch_shapes=[pltpu.VMEM((n, HIDDEN_SIZE), jnp.float32)],
    )(tok_tm, eps_flat, params["embed"], params["wih"], params["whh"],
      params["b_lstm"], params["w_head"], params["b_head"],
      params["wout"], params["bout"])

    # tiny output-formatting ops (time-major full-batch -> batch-first B-1 slice)
    mu = mu_flat.reshape(seq_len, batch, LINERA_SIZE)[:, :b_enc].transpose(1, 0, 2)
    logvar = logvar_flat.reshape(seq_len, batch, LINERA_SIZE)[:, :b_enc].transpose(1, 0, 2)
    return predicts, mu, logvar


# ----------------------------- params ------------------------------------------
def init_params(key):
    ks = jax.random.split(key, 10)
    s = 0.1
    wm = s * jax.random.normal(ks[4], (HIDDEN_SIZE, LINERA_SIZE), jnp.float32)
    bm = s * jax.random.normal(ks[5], (1, LINERA_SIZE), jnp.float32)
    ws = s * jax.random.normal(ks[6], (HIDDEN_SIZE, LINERA_SIZE), jnp.float32)
    bs = s * jax.random.normal(ks[7], (1, LINERA_SIZE), jnp.float32)
    return dict(
        embed=jax.random.normal(ks[0], (DICT_SIZE, EMBED_SIZE), jnp.float32),
        # LSTM weights stored transposed: (in, 4H) / (H, 4H); bias = b_ih + b_hh.
        wih=s * jax.random.normal(ks[1], (EMBED_SIZE, 4 * HIDDEN_SIZE), jnp.float32),
        whh=s * jax.random.normal(ks[2], (HIDDEN_SIZE, 4 * HIDDEN_SIZE), jnp.float32),
        b_lstm=s * jax.random.normal(ks[3], (1, 4 * HIDDEN_SIZE), jnp.float32),
        # Fused mu|logvar head: [Wm | Ws], [bm | bs]  (one MXU push in-kernel).
        w_head=jnp.concatenate([wm, ws], axis=1),                 # (H, 2*LIN)
        b_head=jnp.concatenate([bm, bs], axis=1),                 # (1, 2*LIN)
        wout=s * jax.random.normal(ks[8], (HIDDEN_SIZE, OUTPUT_SIZE), jnp.float32),
        bout=s * jax.random.normal(ks[9], (1, OUTPUT_SIZE), jnp.float32),
    )


# ----------------------------- main -------------------------------------------
if __name__ == "__main__":
    root = jax.random.PRNGKey(0)
    k_param, k_x, k_eps = jax.random.split(root, 3)

    params = init_params(k_param)
    x = jax.random.randint(k_x, (BATCH_SIZE, MAX_LEN), 0, DICT_SIZE, dtype=jnp.int32)
    eps = jax.random.normal(k_eps, (MAX_LEN, BATCH_SIZE, LINERA_SIZE), jnp.float32)

    predicts, mu, logvar = vae_forward(params, x, eps)
    jax.block_until_ready((predicts, mu, logvar))

    assert predicts.shape == (MAX_LEN, BATCH_SIZE - 1, OUTPUT_SIZE)
    assert mu.shape == (BATCH_SIZE - 1, MAX_LEN, LINERA_SIZE)
    assert logvar.shape == (BATCH_SIZE - 1, MAX_LEN, LINERA_SIZE)
    assert bool(jnp.all(jnp.isfinite(predicts)))
    assert bool(jnp.all(jnp.isfinite(mu)))
    assert bool(jnp.all(jnp.isfinite(logvar)))
    print("KERNEL_OK")
</pallas_src>

<mosaic_0001>
module attributes {stable_mosaic.version = 11 : i64} {
  func.func @vae_kernel(%arg0: memref<24x1xi32, #tpu.memory_space<vmem>>, %arg1: memref<24x16xf32, #tpu.memory_space<vmem>>, %arg2: memref<32x16xf32, #tpu.memory_space<vmem>>, %arg3: memref<16x32xf32, #tpu.memory_space<vmem>>, %arg4: memref<8x32xf32, #tpu.memory_space<vmem>>, %arg5: memref<1x32xf32, #tpu.memory_space<vmem>>, %arg6: memref<8x32xf32, #tpu.memory_space<vmem>>, %arg7: memref<1x32xf32, #tpu.memory_space<vmem>>, %arg8: memref<8x32xf32, #tpu.memory_space<vmem>>, %arg9: memref<1x32xf32, #tpu.memory_space<vmem>>, %arg10: memref<6x3x32xf32, #tpu.memory_space<vmem>>, %arg11: memref<24x16xf32, #tpu.memory_space<vmem>>, %arg12: memref<24x16xf32, #tpu.memory_space<vmem>>, %arg13: memref<24x8xf32, #tpu.memory_space<vmem>>) attributes {dimension_semantics = [], scalar_prefetch = 0 : i64, scratch_operands = 1 : i64, tpu.core_type = #tpu.core_type<tc>} {
    %c0 = arith.constant 0 : index
    %c0_0 = arith.constant 0 : index
    %0 = vector.load %arg2[%c0, %c0_0] : memref<32x16xf32, #tpu.memory_space<vmem>>, vector<32x16xf32>
    %c0_1 = arith.constant 0 : index
    %c0_2 = arith.constant 0 : index
    %1 = vector.load %arg3[%c0_1, %c0_2] : memref<16x32xf32, #tpu.memory_space<vmem>>, vector<16x32xf32>
    %c0_3 = arith.constant 0 : index
    %c0_4 = arith.constant 0 : index
    %2 = vector.load %arg4[%c0_3, %c0_4] : memref<8x32xf32, #tpu.memory_space<vmem>>, vector<8x32xf32>
    %c0_5 = arith.constant 0 : index
    %c0_6 = arith.constant 0 : index
    %3 = vector.load %arg5[%c0_5, %c0_6] : memref<1x32xf32, #tpu.memory_space<vmem>>, vector<1x32xf32>
    %c0_7 = arith.constant 0 : index
    %c0_8 = arith.constant 0 : index
    %4 = vector.load %arg8[%c0_7, %c0_8] : memref<8x32xf32, #tpu.memory_space<vmem>>, vector<8x32xf32>
    %c0_9 = arith.constant 0 : index
    %c0_10 = arith.constant 0 : index
    %5 = vector.load %arg9[%c0_9, %c0_10] : memref<1x32xf32, #tpu.memory_space<vmem>>, vector<1x32xf32>
    %c0_11 = arith.constant 0 : index
    %c0_12 = arith.constant 0 : index
    %6 = vector.load %arg0[%c0_11, %c0_12] : memref<24x1xi32, #tpu.memory_space<vmem>>, vector<24x1xi32>
    %7 = tpu.iota {dimensions = array<i32: 1>} : vector<24x32xi32>
    %8 = vector.broadcast %6 : vector<24x1xi32> to vector<24x32xi32>
    %9 = arith.cmpi eq, %8, %7 : vector<24x32xi32>
    %10 = arith.extui %9 : vector<24x32xi1> to vector<24x32xi32>
    %11 = arith.sitofp %10 : vector<24x32xi32> to vector<24x32xf32>
    %cst = arith.constant dense<0.000000e+00> : vector<24x16xf32>
    %12 = tpu.matmul %11, %0, %cst {dimension_numbers = #tpu.dot_dimension_numbers<[1], [0], [0], [1], [0, 0, 1, 1], [], []>} : vector<24x32xf32>, vector<32x16xf32>, vector<24x16xf32> -> vector<24x16xf32>
    %cst_13 = arith.constant dense<0.000000e+00> : vector<24x32xf32>
    %13 = tpu.matmul %12, %1, %cst_13 {dimension_numbers = #tpu.dot_dimension_numbers<[1], [0], [0], [1], [0, 0, 1, 1], [], []>} : vector<24x16xf32>, vector<16x32xf32>, vector<24x32xf32> -> vector<24x32xf32>
    %14 = vector.broadcast %3 : vector<1x32xf32> to vector<24x32xf32>
    %15 = arith.addf %13, %14 : vector<24x32xf32>
    %cst_14 = arith.constant 0.000000e+00 : f32
    %16 = vector.broadcast %cst_14 : f32 to vector<4x8xf32>
    %cst_15 = arith.constant 0.000000e+00 : f32
    %17 = vector.broadcast %cst_15 : f32 to vector<4x8xf32>
    %18 = vector.extract_strided_slice %15 {offsets = [0, 0], sizes = [4, 32], strides = [1, 1]} : vector<24x32xf32> to vector<4x32xf32>
    %cst_16 = arith.constant dense<0.000000e+00> : vector<4x32xf32>
    %19 = tpu.matmul %16, %2, %cst_16 {dimension_numbers = #tpu.dot_dimension_numbers<[1], [0], [0], [1], [0, 0, 1, 1], [], []>} : vector<4x8xf32>, vector<8x32xf32>, vector<4x32xf32> -> vector<4x32xf32>
    %20 = arith.addf %18, %19 : vector<4x32xf32>
    %21 = vector.extract_strided_slice %20 {offsets = [0, 0], sizes = [4, 8], strides = [1, 1]} : vector<4x32xf32> to vector<4x8xf32>
    %22 = arith.negf %21 : vector<4x8xf32>
    %23 = math.exp %22 : vector<4x8xf32>
    %cst_17 = arith.constant 1.000000e+00 : f32
    %24 = vector.broadcast %cst_17 : f32 to vector<4x8xf32>
    %25 = arith.addf %24, %23 : vector<4x8xf32>
    %26 = arith.divf %24, %25 : vector<4x8xf32>
    %27 = vector.extract_strided_slice %20 {offsets = [0, 8], sizes = [4, 8], strides = [1, 1]} : vector<4x32xf32> to vector<4x8xf32>
    %28 = arith.negf %27 : vector<4x8xf32>
    %29 = math.exp %28 : vector<4x8xf32>
    %cst_18 = arith.constant 1.000000e+00 : f32
    %30 = vector.broadcast %cst_18 : f32 to vector<4x8xf32>
    %31 = arith.addf %30, %29 : vector<4x8xf32>
    %32 = arith.divf %30, %31 : vector<4x8xf32>
    %33 = vector.extract_strided_slice %20 {offsets = [0, 16], sizes = [4, 8], strides = [1, 1]} : vector<4x32xf32> to vector<4x8xf32>
    %34 = math.tanh %33 : vector<4x8xf32>
    %35 = vector.extract_strided_slice %20 {offsets = [0, 24], sizes = [4, 8], strides = [1, 1]} : vector<4x32xf32> to vector<4x8xf32>
    %36 = arith.negf %35 : vector<4x8xf32>
    %37 = math.exp %36 : vector<4x8xf32>
    %cst_19 = arith.constant 1.000000e+00 : f32
    %38 = vector.broadcast %cst_19 : f32 to vector<4x8xf32>
    %39 = arith.addf %38, %37 : vector<4x8xf32>
    %40 = arith.divf %38, %39 : vector<4x8xf32>
    %41 = arith.mulf %32, %17 : vector<4x8xf32>
    %42 = arith.mulf %26, %34 : vector<4x8xf32>
    %43 = arith.addf %41, %42 : vector<4x8xf32>
    %44 = math.tanh %43 : vector<4x8xf32>
    %45 = arith.mulf %40, %44 : vector<4x8xf32>
    %c0_20 = arith.constant 0 : index
    %c0_21 = arith.constant 0 : index
    %46 = vector.load %arg13[%c0_20, %c0_21] : memref<24x8xf32, #tpu.memory_space<vmem>>, vector<4x8xf32>
    tpu.vector_store %arg13[%c0_20, %c0_21], %45 {strides = array<i32>} : memref<24x8xf32, #tpu.memory_space<vmem>>, vector<4x8xf32>,
    %47 = vector.extract_strided_slice %15 {offsets = [4, 0], sizes = [4, 32], strides = [1, 1]} : vector<24x32xf32> to vector<4x32xf32>
    %cst_22 = arith.constant dense<0.000000e+00> : vector<4x32xf32>
    %48 = tpu.matmul %45, %2, %cst_22 {dimension_numbers = #tpu.dot_dimension_numbers<[1], [0], [0], [1], [0, 0, 1, 1], [], []>} : vector<4x8xf32>, vector<8x32xf32>, vector<4x32xf32> -> vector<4x32xf32>
    %49 = arith.addf %47, %48 : vector<4x32xf32>
    %50 = vector.extract_strided_slice %49 {offsets = [0, 0], sizes = [4, 8], strides = [1, 1]} : vector<4x32xf32> to vector<4x8xf32>
    %51 = arith.negf %50 : vector<4x8xf32>
    %52 = math.exp %51 : vector<4x8xf32>
    %cst_23 = arith.constant 1.000000e+00 : f32
    %53 = vector.broadcast %cst_23 : f32 to vector<4x8xf32>
    %54 = arith.addf %53, %52 : vector<4x8xf32>
    %55 = arith.divf %53, %54 : vector<4x8xf32>
    %56 = vector.extract_strided_slice %49 {offsets = [0, 8], sizes = [4, 8], strides = [1, 1]} : vector<4x32xf32> to vector<4x8xf32>
    %57 = arith.negf %56 : vector<4x8xf32>
    %58 = math.exp %57 : vector<4x8xf32>
    %cst_24 = arith.constant 1.000000e+00 : f32
    %59 = vector.broadcast %cst_24 : f32 to vector<4x8xf32>
    %60 = arith.addf %59, %58 : vector<4x8xf32>
    %61 = arith.divf %59, %60 : vector<4x8xf32>
    %62 = vector.extract_strided_slice %49 {offsets = [0, 16], sizes = [4, 8], strides = [1, 1]} : vector<4x32xf32> to vector<4x8xf32>
    %63 = math.tanh %62 : vector<4x8xf32>
    %64 = vector.extract_strided_slice %49 {offsets = [0, 24], sizes = [4, 8], strides = [1, 1]} : vector<4x32xf32> to vector<4x8xf32>
    %65 = arith.negf %64 : vector<4x8xf32>
    %66 = math.exp %65 : vector<4x8xf32>
    %cst_25 = arith.constant 1.000000e+00 : f32
    %67 = vector.broadcast %cst_25 : f32 to vector<4x8xf32>
    %68 = arith.addf %67, %66 : vector<4x8xf32>
    %69 = arith.divf %67, %68 : vector<4x8xf32>
    %70 = arith.mulf %61, %43 : vector<4x8xf32>
    %71 = arith.mulf %55, %63 : vector<4x8xf32>
    %72 = arith.addf %70, %71 : vector<4x8xf32>
    %73 = math.tanh %72 : vector<4x8xf32>
    %74 = arith.mulf %69, %73 : vector<4x8xf32>
    %c4 = arith.constant 4 : index
    %c0_26 = arith.constant 0 : index
    %75 = vector.load %arg13[%c4, %c0_26] : memref<24x8xf32, #tpu.memory_space<vmem>>, vector<4x8xf32>
    tpu.vector_store %arg13[%c4, %c0_26], %74 {strides = array<i32>} : memref<24x8xf32, #tpu.memory_space<vmem>>, vector<4x8xf32>,
    %76 = vector.extract_strided_slice %15 {offsets = [8, 0], sizes = [4, 32], strides = [1, 1]} : vector<24x32xf32> to vector<4x32xf32>
    %cst_27 = arith.constant dense<0.000000e+00> : vector<4x32xf32>
    %77 = tpu.matmul %74, %2, %cst_27 {dimension_numbers = #tpu.dot_dimension_numbers<[1], [0], [0], [1], [0, 0, 1, 1], [], []>} : vector<4x8xf32>, vector<8x32xf32>, vector<4x32xf32> -> vector<4x32xf32>
    %78 = arith.addf %76, %77 : vector<4x32xf32>
    %79 = vector.extract_strided_slice %78 {offsets = [0, 0], sizes = [4, 8], strides = [1, 1]} : vector<4x32xf32> to vector<4x8xf32>
    %80 = arith.negf %79 : vector<4x8xf32>
    %81 = math.exp %80 : vector<4x8xf32>
    %cst_28 = arith.constant 1.000000e+00 : f32
    %82 = vector.broadcast %cst_28 : f32 to vector<4x8xf32>
    %83 = arith.addf %82, %81 : vector<4x8xf32>
    %84 = arith.divf %82, %83 : vector<4x8xf32>
    %85 = vector.extract_strided_slice %78 {offsets = [0, 8], sizes = [4, 8], strides = [1, 1]} : vector<4x32xf32> to vector<4x8xf32>
    %86 = arith.negf %85 : vector<4x8xf32>
    %87 = math.exp %86 : vector<4x8xf32>
    %cst_29 = arith.constant 1.000000e+00 : f32
    %88 = vector.broadcast %cst_29 : f32 to vector<4x8xf32>
    %89 = arith.addf %88, %87 : vector<4x8xf32>
    %90 = arith.divf %88, %89 : vector<4x8xf32>
    %91 = vector.extract_strided_slice %78 {offsets = [0, 16], sizes = [4, 8], strides = [1, 1]} : vector<4x32xf32> to vector<4x8xf32>
    %92 = math.tanh %91 : vector<4x8xf32>
    %93 = vector.extract_strided_slice %78 {offsets = [0, 24], sizes = [4, 8], strides = [1, 1]} : vector<4x32xf32> to vector<4x8xf32>
    %94 = arith.negf %93 : vector<4x8xf32>
    %95 = math.exp %94 : vector<4x8xf32>
    %cst_30 = arith.constant 1.000000e+00 : f32
    %96 = vector.broadcast %cst_30 : f32 to vector<4x8xf32>
    %97 = arith.addf %96, %95 : vector<4x8xf32>
    %98 = arith.divf %96, %97 : vector<4x8xf32>
    %99 = arith.mulf %90, %72 : vector<4x8xf32>
    %100 = arith.mulf %84, %92 : vector<4x8xf32>
    %101 = arith.addf %99, %100 : vector<4x8xf32>
    %102 = math.tanh %101 : vector<4x8xf32>
    %103 = arith.mulf %98, %102 : vector<4x8xf32>
    %c8 = arith.constant 8 : index
    %c0_31 = arith.constant 0 : index
    %104 = vector.load %arg13[%c8, %c0_31] : memref<24x8xf32, #tpu.memory_space<vmem>>, vector<4x8xf32>
    tpu.vector_store %arg13[%c8, %c0_31], %103 {strides = array<i32>} : memref<24x8xf32, #tpu.memory_space<vmem>>, vector<4x8xf32>,
    %105 = vector.extract_strided_slice %15 {offsets = [12, 0], sizes = [4, 32], strides = [1, 1]} : vector<24x32xf32> to vector<4x32xf32>
    %cst_32 = arith.constant dense<0.000000e+00> : vector<4x32xf32>
    %106 = tpu.matmul %103, %2, %cst_32 {dimension_numbers = #tpu.dot_dimension_numbers<[1], [0], [0], [1], [0, 0, 1, 1], [], []>} : vector<4x8xf32>, vector<8x32xf32>, vector<4x32xf32> -> vector<4x32xf32>
    %107 = arith.addf %105, %106 : vector<4x32xf32>
    %108 = vector.extract_strided_slice %107 {offsets = [0, 0], sizes = [4, 8], strides = [1, 1]} : vector<4x32xf32> to vector<4x8xf32>
    %109 = arith.negf %108 : vector<4x8xf32>
    %110 = math.exp %109 : vector<4x8xf32>
    %cst_33 = arith.constant 1.000000e+00 : f32
    %111 = vector.broadcast %cst_33 : f32 to vector<4x8xf32>
    %112 = arith.addf %111, %110 : vector<4x8xf32>
    %113 = arith.divf %111, %112 : vector<4x8xf32>
    %114 = vector.extract_strided_slice %107 {offsets = [0, 8], sizes = [4, 8], strides = [1, 1]} : vector<4x32xf32> to vector<4x8xf32>
    %115 = arith.negf %114 : vector<4x8xf32>
    %116 = math.exp %115 : vector<4x8xf32>
    %cst_34 = arith.constant 1.000000e+00 : f32
    %117 = vector.broadcast %cst_34 : f32 to vector<4x8xf32>
    %118 = arith.addf %117, %116 : vector<4x8xf32>
    %119 = arith.divf %117, %118 : vector<4x8xf32>
    %120 = vector.extract_strided_slice %107 {offsets = [0, 16], sizes = [4, 8], strides = [1, 1]} : vector<4x32xf32> to vector<4x8xf32>
    %121 = math.tanh %120 : vector<4x8xf32>
    %122 = vector.extract_strided_slice %107 {offsets = [0, 24], sizes = [4, 8], strides = [1, 1]} : vector<4x32xf32> to vector<4x8xf32>
    %123 = arith.negf %122 : vector<4x8xf32>
    %124 = math.exp %123 : vector<4x8xf32>
    %cst_35 = arith.constant 1.000000e+00 : f32
    %125 = vector.broadcast %cst_35 : f32 to vector<4x8xf32>
    %126 = arith.addf %125, %124 : vector<4x8xf32>
    %127 = arith.divf %125, %126 : vector<4x8xf32>
    %128 = arith.mulf %119, %101 : vector<4x8xf32>
    %129 = arith.mulf %113, %121 : vector<4x8xf32>
    %130 = arith.addf %128, %129 : vector<4x8xf32>
    %131 = math.tanh %130 : vector<4x8xf32>
    %132 = arith.mulf %127, %131 : vector<4x8xf32>
    %c12 = arith.constant 12 : index
    %c0_36 = arith.constant 0 : index
    %133 = vector.load %arg13[%c12, %c0_36] : memref<24x8xf32, #tpu.memory_space<vmem>>, vector<4x8xf32>
    tpu.vector_store %arg13[%c12, %c0_36], %132 {strides = array<i32>} : memref<24x8xf32, #tpu.memory_space<vmem>>, vector<4x8xf32>,
    %134 = vector.extract_strided_slice %15 {offsets = [16, 0], sizes = [4, 32], strides = [1, 1]} : vector<24x32xf32> to vector<4x32xf32>
    %cst_37 = arith.constant dense<0.000000e+00> : vector<4x32xf32>
    %135 = tpu.matmul %132, %2, %cst_37 {dimension_numbers = #tpu.dot_dimension_numbers<[1], [0], [0], [1], [0, 0, 1, 1], [], []>} : vector<4x8xf32>, vector<8x32xf32>, vector<4x32xf32> -> vector<4x32xf32>
    %136 = arith.addf %134, %135 : vector<4x32xf32>
    %137 = vector.extract_strided_slice %136 {offsets = [0, 0], sizes = [4, 8], strides = [1, 1]} : vector<4x32xf32> to vector<4x8xf32>
    %138 = arith.negf %137 : vector<4x8xf32>
    %139 = math.exp %138 : vector<4x8xf32>
    %cst_38 = arith.constant 1.000000e+00 : f32
    %140 = vector.broadcast %cst_38 : f32 to vector<4x8xf32>
    %141 = arith.addf %140, %139 : vector<4x8xf32>
    %142 = arith.divf %140, %141 : vector<4x8xf32>
    %143 = vector.extract_strided_slice %136 {offsets = [0, 8], sizes = [4, 8], strides = [1, 1]} : vector<4x32xf32> to vector<4x8xf32>
    %144 = arith.negf %143 : vector<4x8xf32>
    %145 = math.exp %144 : vector<4x8xf32>
    %cst_39 = arith.constant 1.000000e+00 : f32
    %146 = vector.broadcast %cst_39 : f32 to vector<4x8xf32>
    %147 = arith.addf %146, %145 : vector<4x8xf32>
    %148 = arith.divf %146, %147 : vector<4x8xf32>
    %149 = vector.extract_strided_slice %136 {offsets = [0, 16], sizes = [4, 8], strides = [1, 1]} : vector<4x32xf32> to vector<4x8xf32>
    %150 = math.tanh %149 : vector<4x8xf32>
    %151 = vector.extract_strided_slice %136 {offsets = [0, 24], sizes = [4, 8], strides = [1, 1]} : vector<4x32xf32> to vector<4x8xf32>
    %152 = arith.negf %151 : vector<4x8xf32>
    %153 = math.exp %152 : vector<4x8xf32>
    %cst_40 = arith.constant 1.000000e+00 : f32
    %154 = vector.broadcast %cst_40 : f32 to vector<4x8xf32>
    %155 = arith.addf %154, %153 : vector<4x8xf32>
    %156 = arith.divf %154, %155 : vector<4x8xf32>
    %157 = arith.mulf %148, %130 : vector<4x8xf32>
    %158 = arith.mulf %142, %150 : vector<4x8xf32>
    %159 = arith.addf %157, %158 : vector<4x8xf32>
    %160 = math.tanh %159 : vector<4x8xf32>
    %161 = arith.mulf %156, %160 : vector<4x8xf32>
    %c16 = arith.constant 16 : index
    %c0_41 = arith.constant 0 : index
    %162 = vector.load %arg13[%c16, %c0_41] : memref<24x8xf32, #tpu.memory_space<vmem>>, vector<4x8xf32>
    tpu.vector_store %arg13[%c16, %c0_41], %161 {strides = array<i32>} : memref<24x8xf32, #tpu.memory_space<vmem>>, vector<4x8xf32>,
    %163 = vector.extract_strided_slice %15 {offsets = [20, 0], sizes = [4, 32], strides = [1, 1]} : vector<24x32xf32> to vector<4x32xf32>
    %cst_42 = arith.constant dense<0.000000e+00> : vector<4x32xf32>
    %164 = tpu.matmul %161, %2, %cst_42 {dimension_numbers = #tpu.dot_dimension_numbers<[1], [0], [0], [1], [0, 0, 1, 1], [], []>} : vector<4x8xf32>, vector<8x32xf32>, vector<4x32xf32> -> vector<4x32xf32>
    %165 = arith.addf %163, %164 : vector<4x32xf32>
    %166 = vector.extract_strided_slice %165 {offsets = [0, 0], sizes = [4, 8], strides = [1, 1]} : vector<4x32xf32> to vector<4x8xf32>
    %167 = arith.negf %166 : vector<4x8xf32>
    %168 = math.exp %167 : vector<4x8xf32>
    %cst_43 = arith.constant 1.000000e+00 : f32
    %169 = vector.broadcast %cst_43 : f32 to vector<4x8xf32>
    %170 = arith.addf %169, %168 : vector<4x8xf32>
    %171 = arith.divf %169, %170 : vector<4x8xf32>
    %172 = vector.extract_strided_slice %165 {offsets = [0, 8], sizes = [4, 8], strides = [1, 1]} : vector<4x32xf32> to vector<4x8xf32>
    %173 = arith.negf %172 : vector<4x8xf32>
    %174 = math.exp %173 : vector<4x8xf32>
    %cst_44 = arith.constant 1.000000e+00 : f32
    %175 = vector.broadcast %cst_44 : f32 to vector<4x8xf32>
    %176 = arith.addf %175, %174 : vector<4x8xf32>
    %177 = arith.divf %175, %176 : vector<4x8xf32>
    %178 = vector.extract_strided_slice %165 {offsets = [0, 16], sizes = [4, 8], strides = [1, 1]} : vector<4x32xf32> to vector<4x8xf32>
    %179 = math.tanh %178 : vector<4x8xf32>
    %180 = vector.extract_strided_slice %165 {offsets = [0, 24], sizes = [4, 8], strides = [1, 1]} : vector<4x32xf32> to vector<4x8xf32>
    %181 = arith.negf %180 : vector<4x8xf32>
    %182 = math.exp %181 : vector<4x8xf32>
    %cst_45 = arith.constant 1.000000e+00 : f32
    %183 = vector.broadcast %cst_45 : f32 to vector<4x8xf32>
    %184 = arith.addf %183, %182 : vector<4x8xf32>
    %185 = arith.divf %183, %184 : vector<4x8xf32>
    %186 = arith.mulf %177, %159 : vector<4x8xf32>
    %187 = arith.mulf %171, %179 : vector<4x8xf32>
    %188 = arith.addf %186, %187 : vector<4x8xf32>
    %189 = math.tanh %188 : vector<4x8xf32>
    %190 = arith.mulf %185, %189 : vector<4x8xf32>
    %c20 = arith.constant 20 : index
    %c0_46 = arith.constant 0 : index
    %191 = vector.load %arg13[%c20, %c0_46] : memref<24x8xf32, #tpu.memory_space<vmem>>, vector<4x8xf32>
    tpu.vector_store %arg13[%c20, %c0_46], %190 {strides = array<i32>} : memref<24x8xf32, #tpu.memory_space<vmem>>, vector<4x8xf32>,
    %c0_47 = arith.constant 0 : index
    %c0_48 = arith.constant 0 : index
    %192 = vector.load %arg13[%c0_47, %c0_48] : memref<24x8xf32, #tpu.memory_space<vmem>>, vector<24x8xf32>
    %c0_49 = arith.constant 0 : index
    %c0_50 = arith.constant 0 : index
    %193 = vector.load %arg6[%c0_49, %c0_50] : memref<8x32xf32, #tpu.memory_space<vmem>>, vector<8x32xf32>
    %cst_51 = arith.constant dense<0.000000e+00> : vector<24x32xf32>
    %194 = tpu.matmul %192, %193, %cst_51 {dimension_numbers = #tpu.dot_dimension_numbers<[1], [0], [0], [1], [0, 0, 1, 1], [], []>} : vector<24x8xf32>, vector<8x32xf32>, vector<24x32xf32> -> vector<24x32xf32>
    %c0_52 = arith.constant 0 : index
    %c0_53 = arith.constant 0 : index
    %195 = vector.load %arg7[%c0_52, %c0_53] : memref<1x32xf32, #tpu.memory_space<vmem>>, vector<1x32xf32>
    %196 = vector.broadcast %195 : vector<1x32xf32> to vector<24x32xf32>
    %197 = arith.addf %194, %196 : vector<24x32xf32>
    %198 = vector.extract_strided_slice %197 {offsets = [0, 0], sizes = [24, 16], strides = [1, 1]} : vector<24x32xf32> to vector<24x16xf32>
    %199 = vector.extract_strided_slice %197 {offsets = [0, 16], sizes = [24, 16], strides = [1, 1]} : vector<24x32xf32> to vector<24x16xf32>
    %cst_54 = arith.constant 0.000000e+00 : f32
    %200 = vector.broadcast %cst_54 : f32 to vector<24x16xf32>
    %201 = arith.maximumf %199, %200 : vector<24x16xf32>
    %202 = math.absf %199 : vector<24x16xf32>
    %cst_55 = arith.constant 0.000000e+00 : f32
    %203 = vector.broadcast %cst_55 : f32 to vector<24x16xf32>
    %204 = arith.subf %203, %202 : vector<24x16xf32>
    %205 = math.exp %204 : vector<24x16xf32>
    %206 = math.log1p %205 : vector<24x16xf32>
    %207 = arith.addf %201, %206 : vector<24x16xf32>
    %208 = math.exp %207 : vector<24x16xf32>
    %cst_56 = arith.constant 5.000000e-01 : f32
    %209 = vector.broadcast %cst_56 : f32 to vector<24x16xf32>
    %210 = arith.mulf %209, %208 : vector<24x16xf32>
    %c0_57 = arith.constant 0 : index
    %c0_58 = arith.constant 0 : index
    %211 = vector.load %arg1[%c0_57, %c0_58] : memref<24x16xf32, #tpu.memory_space<vmem>>, vector<24x16xf32>
    %212 = arith.mulf %211, %210 : vector<24x16xf32>
    %213 = arith.addf %212, %198 : vector<24x16xf32>
    %c0_59 = arith.constant 0 : index
    %c0_60 = arith.constant 0 : index
    %214 = vector.load %arg11[%c0_59, %c0_60] : memref<24x16xf32, #tpu.memory_space<vmem>>, vector<24x16xf32>
    tpu.vector_store %arg11[%c0_59, %c0_60], %198 {strides = array<i32>} : memref<24x16xf32, #tpu.memory_space<vmem>>, vector<24x16xf32>,
    %c0_61 = arith.constant 0 : index
    %c0_62 = arith.constant 0 : index
    %215 = vector.load %arg12[%c0_61, %c0_62] : memref<24x16xf32, #tpu.memory_space<vmem>>, vector<24x16xf32>
    tpu.vector_store %arg12[%c0_61, %c0_62], %207 {strides = array<i32>} : memref<24x16xf32, #tpu.memory_space<vmem>>, vector<24x16xf32>,
    %216 = vector.extract_strided_slice %213 {offsets = [20, 0], sizes = [3, 16], strides = [1, 1]} : vector<24x16xf32> to vector<3x16xf32>
    %cst_63 = arith.constant dense<0.000000e+00> : vector<3x32xf32>
    %217 = tpu.matmul %216, %1, %cst_63 {dimension_numbers = #tpu.dot_dimension_numbers<[1], [0], [0], [1], [0, 0, 1, 1], [], []>} : vector<3x16xf32>, vector<16x32xf32>, vector<3x32xf32> -> vector<3x32xf32>
    %218 = vector.broadcast %3 : vector<1x32xf32> to vector<3x32xf32>
    %219 = arith.addf %217, %218 : vector<3x32xf32>
    %220 = vector.extract_strided_slice %6 {offsets = [0, 0], sizes = [3, 1], strides = [1, 1]} : vector<24x1xi32> to vector<3x1xi32>
    %cst_64 = arith.constant 0.000000e+00 : f32
    %221 = vector.broadcast %cst_64 : f32 to vector<3x32xf32>
    %c0_65 = arith.constant 0 : index
    %c0_66 = arith.constant 0 : index
    %c0_67 = arith.constant 0 : index
    %222 = vector.load %arg10[%c0_65, %c0_66, %c0_67] : memref<6x3x32xf32, #tpu.memory_space<vmem>>, vector<1x3x32xf32>
    %223 = vector.shape_cast %222 : vector<1x3x32xf32> to vector<3x32xf32>
    %224 = vector.shape_cast %221 : vector<3x32xf32> to vector<1x3x32xf32>
    tpu.vector_store %arg10[%c0_65, %c0_66, %c0_67], %224 {strides = array<i32>} : memref<6x3x32xf32, #tpu.memory_space<vmem>>, vector<1x3x32xf32>,
    %225 = tpu.iota {dimensions = array<i32: 1>} : vector<3x32xi32>
    %226 = vector.broadcast %220 : vector<3x1xi32> to vector<3x32xi32>
    %227 = arith.cmpi eq, %226, %225 : vector<3x32xi32>
    %228 = arith.extui %227 : vector<3x32xi1> to vector<3x32xi32>
    %229 = arith.sitofp %228 : vector<3x32xi32> to vector<3x32xf32>
    %cst_68 = arith.constant dense<0.000000e+00> : vector<3x16xf32>
    %230 = tpu.matmul %229, %0, %cst_68 {dimension_numbers = #tpu.dot_dimension_numbers<[1], [0], [0], [1], [0, 0, 1, 1], [], []>} : vector<3x32xf32>, vector<32x16xf32>, vector<3x16xf32> -> vector<3x16xf32>
    %cst_69 = arith.constant dense<0.000000e+00> : vector<3x32xf32>
    %231 = tpu.matmul %230, %1, %cst_69 {dimension_numbers = #tpu.dot_dimension_numbers<[1], [0], [0], [1], [0, 0, 1, 1], [], []>} : vector<3x16xf32>, vector<16x32xf32>, vector<3x32xf32> -> vector<3x32xf32>
    %232 = vector.broadcast %3 : vector<1x32xf32> to vector<3x32xf32>
    %233 = arith.addf %231, %232 : vector<3x32xf32>
    %234 = vector.extract_strided_slice %233 {offsets = [0, 0], sizes = [3, 8], strides = [1, 1]} : vector<3x32xf32> to vector<3x8xf32>
    %235 = arith.negf %234 : vector<3x8xf32>
    %236 = math.exp %235 : vector<3x8xf32>
    %cst_70 = arith.constant 1.000000e+00 : f32
    %237 = vector.broadcast %cst_70 : f32 to vector<3x8xf32>
    %238 = arith.addf %237, %236 : vector<3x8xf32>
    %239 = arith.divf %237, %238 : vector<3x8xf32>
    %240 = vector.extract_strided_slice %233 {offsets = [0, 16], sizes = [3, 8], strides = [1, 1]} : vector<3x32xf32> to vector<3x8xf32>
    %241 = math.tanh %240 : vector<3x8xf32>
    %242 = vector.extract_strided_slice %233 {offsets = [0, 24], sizes = [3, 8], strides = [1, 1]} : vector<3x32xf32> to vector<3x8xf32>
    %243 = arith.negf %242 : vector<3x8xf32>
    %244 = math.exp %243 : vector<3x8xf32>
    %cst_71 = arith.constant 1.000000e+00 : f32
    %245 = vector.broadcast %cst_71 : f32 to vector<3x8xf32>
    %246 = arith.addf %245, %244 : vector<3x8xf32>
    %247 = arith.divf %245, %246 : vector<3x8xf32>
    %248 = arith.mulf %239, %241 : vector<3x8xf32>
    %249 = math.tanh %248 : vector<3x8xf32>
    %250 = arith.mulf %247, %249 : vector<3x8xf32>
    %cst_72 = arith.constant dense<0.000000e+00> : vector<3x32xf32>
    %251 = tpu.matmul %250, %2, %cst_72 {dimension_numbers = #tpu.dot_dimension_numbers<[1], [0], [0], [1], [0, 0, 1, 1], [], []>} : vector<3x8xf32>, vector<8x32xf32>, vector<3x32xf32> -> vector<3x32xf32>
    %252 = arith.addf %219, %251 : vector<3x32xf32>
    %253 = vector.extract_strided_slice %252 {offsets = [0, 0], sizes = [3, 8], strides = [1, 1]} : vector<3x32xf32> to vector<3x8xf32>
    %254 = arith.negf %253 : vector<3x8xf32>
    %255 = math.exp %254 : vector<3x8xf32>
    %cst_73 = arith.constant 1.000000e+00 : f32
    %256 = vector.broadcast %cst_73 : f32 to vector<3x8xf32>
    %257 = arith.addf %256, %255 : vector<3x8xf32>
    %258 = arith.divf %256, %257 : vector<3x8xf32>
    %259 = vector.extract_strided_slice %252 {offsets = [0, 8], sizes = [3, 8], strides = [1, 1]} : vector<3x32xf32> to vector<3x8xf32>
    %260 = arith.negf %259 : vector<3x8xf32>
    %261 = math.exp %260 : vector<3x8xf32>
    %cst_74 = arith.constant 1.000000e+00 : f32
    %262 = vector.broadcast %cst_74 : f32 to vector<3x8xf32>
    %263 = arith.addf %262, %261 : vector<3x8xf32>
    %264 = arith.divf %262, %263 : vector<3x8xf32>
    %265 = vector.extract_strided_slice %252 {offsets = [0, 16], sizes = [3, 8], strides = [1, 1]} : vector<3x32xf32> to vector<3x8xf32>
    %266 = math.tanh %265 : vector<3x8xf32>
    %267 = vector.extract_strided_slice %252 {offsets = [0, 24], sizes = [3, 8], strides = [1, 1]} : vector<3x32xf32> to vector<3x8xf32>
    %268 = arith.negf %267 : vector<3x8xf32>
    %269 = math.exp %268 : vector<3x8xf32>
    %cst_75 = arith.constant 1.000000e+00 : f32
    %270 = vector.broadcast %cst_75 : f32 to vector<3x8xf32>
    %271 = arith.addf %270, %269 : vector<3x8xf32>
    %272 = arith.divf %270, %271 : vector<3x8xf32>
    %273 = arith.mulf %264, %248 : vector<3x8xf32>
    %274 = arith.mulf %258, %266 : vector<3x8xf32>
    %275 = arith.addf %273, %274 : vector<3x8xf32>
    %276 = math.tanh %275 : vector<3x8xf32>
    %277 = arith.mulf %272, %276 : vector<3x8xf32>
    %cst_76 = arith.constant dense<0.000000e+00> : vector<3x32xf32>
    %278 = tpu.matmul %277, %4, %cst_76 {dimension_numbers = #tpu.dot_dimension_numbers<[1], [0], [0], [1], [0, 0, 1, 1], [], []>} : vector<3x8xf32>, vector<8x32xf32>, vector<3x32xf32> -> vector<3x32xf32>
    %279 = vector.broadcast %5 : vector<1x32xf32> to vector<3x32xf32>
    %280 = arith.addf %278, %279 : vector<3x32xf32>
    %c1 = arith.constant 1 : index
    %c0_77 = arith.constant 0 : index
    %c0_78 = arith.constant 0 : index
    %281 = vector.load %arg10[%c1, %c0_77, %c0_78] : memref<6x3x32xf32, #tpu.memory_space<vmem>>, vector<1x3x32xf32>
    %282 = vector.shape_cast %281 : vector<1x3x32xf32> to vector<3x32xf32>
    %283 = vector.shape_cast %280 : vector<3x32xf32> to vector<1x3x32xf32>
    tpu.vector_store %arg10[%c1, %c0_77, %c0_78], %283 {strides = array<i32>} : memref<6x3x32xf32, #tpu.memory_space<vmem>>, vector<1x3x32xf32>,
    %cst_79 = arith.constant dense<0xFF800000> : vector<3xf32>
    %284 = vector.multi_reduction <maximumf>, %280, %cst_79 [1] : vector<3x32xf32> to vector<3xf32>
    %285 = vector.shape_cast %284 : vector<3xf32> to vector<3x1xf32>
    %286 = tpu.iota {dimensions = array<i32: 1>} : vector<3x32xi32>
    %287 = vector.broadcast %285 : vector<3x1xf32> to vector<3x32xf32>
    %288 = arith.cmpf oeq, %280, %287 : vector<3x32xf32>
    %c32_i32 = arith.constant 32 : i32
    %289 = vector.broadcast %c32_i32 : i32 to vector<3x32xi32>
    %290 = arith.select %288, %286, %289 : vector<3x32xi1>, vector<3x32xi32>
    %cst_80 = arith.constant dense<2147483647> : vector<3xi32>
    %291 = vector.multi_reduction <minsi>, %290, %cst_80 [1] : vector<3x32xi32> to vector<3xi32>
    %292 = vector.shape_cast %291 : vector<3xi32> to vector<3x1xi32>
    %293 = tpu.iota {dimensions = array<i32: 1>} : vector<3x32xi32>
    %294 = vector.broadcast %292 : vector<3x1xi32> to vector<3x32xi32>
    %295 = arith.cmpi eq, %294, %293 : vector<3x32xi32>
    %296 = arith.extui %295 : vector<3x32xi1> to vector<3x32xi32>
    %297 = arith.sitofp %296 : vector<3x32xi32> to vector<3x32xf32>
    %cst_81 = arith.constant dense<0.000000e+00> : vector<3x16xf32>
    %298 = tpu.matmul %297, %0, %cst_81 {dimension_numbers = #tpu.dot_dimension_numbers<[1], [0], [0], [1], [0, 0, 1, 1], [], []>} : vector<3x32xf32>, vector<32x16xf32>, vector<3x16xf32> -> vector<3x16xf32>
    %cst_82 = arith.constant dense<0.000000e+00> : vector<3x32xf32>
    %299 = tpu.matmul %298, %1, %cst_82 {dimension_numbers = #tpu.dot_dimension_numbers<[1], [0], [0], [1], [0, 0, 1, 1], [], []>} : vector<3x16xf32>, vector<16x32xf32>, vector<3x32xf32> -> vector<3x32xf32>
    %300 = vector.broadcast %3 : vector<1x32xf32> to vector<3x32xf32>
    %301 = arith.addf %299, %300 : vector<3x32xf32>
    %302 = vector.extract_strided_slice %301 {offsets = [0, 0], sizes = [3, 8], strides = [1, 1]} : vector<3x32xf32> to vector<3x8xf32>
    %303 = arith.negf %302 : vector<3x8xf32>
    %304 = math.exp %303 : vector<3x8xf32>
    %cst_83 = arith.constant 1.000000e+00 : f32
    %305 = vector.broadcast %cst_83 : f32 to vector<3x8xf32>
    %306 = arith.addf %305, %304 : vector<3x8xf32>
    %307 = arith.divf %305, %306 : vector<3x8xf32>
    %308 = vector.extract_strided_slice %301 {offsets = [0, 16], sizes = [3, 8], strides = [1, 1]} : vector<3x32xf32> to vector<3x8xf32>
    %309 = math.tanh %308 : vector<3x8xf32>
    %310 = vector.extract_strided_slice %301 {offsets = [0, 24], sizes = [3, 8], strides = [1, 1]} : vector<3x32xf32> to vector<3x8xf32>
    %311 = arith.negf %310 : vector<3x8xf32>
    %312 = math.exp %311 : vector<3x8xf32>
    %cst_84 = arith.constant 1.000000e+00 : f32
    %313 = vector.broadcast %cst_84 : f32 to vector<3x8xf32>
    %314 = arith.addf %313, %312 : vector<3x8xf32>
    %315 = arith.divf %313, %314 : vector<3x8xf32>
    %316 = arith.mulf %307, %309 : vector<3x8xf32>
    %317 = math.tanh %316 : vector<3x8xf32>
    %318 = arith.mulf %315, %317 : vector<3x8xf32>
    %cst_85 = arith.constant dense<0.000000e+00> : vector<3x32xf32>
    %319 = tpu.matmul %318, %2, %cst_85 {dimension_numbers = #tpu.dot_dimension_numbers<[1], [0], [0], [1], [0, 0, 1, 1], [], []>} : vector<3x8xf32>, vector<8x32xf32>, vector<3x32xf32> -> vector<3x32xf32>
    %320 = arith.addf %219, %319 : vector<3x32xf32>
    %321 = vector.extract_strided_slice %320 {offsets = [0, 0], sizes = [3, 8], strides = [1, 1]} : vector<3x32xf32> to vector<3x8xf32>
    %322 = arith.negf %321 : vector<3x8xf32>
    %323 = math.exp %322 : vector<3x8xf32>
    %cst_86 = arith.constant 1.000000e+00 : f32
    %324 = vector.broadcast %cst_86 : f32 to vector<3x8xf32>
    %325 = arith.addf %324, %323 : vector<3x8xf32>
    %326 = arith.divf %324, %325 : vector<3x8xf32>
    %327 = vector.extract_strided_slice %320 {offsets = [0, 8], sizes = [3, 8], strides = [1, 1]} : vector<3x32xf32> to vector<3x8xf32>
    %328 = arith.negf %327 : vector<3x8xf32>
    %329 = math.exp %328 : vector<3x8xf32>
    %cst_87 = arith.constant 1.000000e+00 : f32
    %330 = vector.broadcast %cst_87 : f32 to vector<3x8xf32>
    %331 = arith.addf %330, %329 : vector<3x8xf32>
    %332 = arith.divf %330, %331 : vector<3x8xf32>
    %333 = vector.extract_strided_slice %320 {offsets = [0, 16], sizes = [3, 8], strides = [1, 1]} : vector<3x32xf32> to vector<3x8xf32>
    %334 = math.tanh %333 : vector<3x8xf32>
    %335 = vector.extract_strided_slice %320 {offsets = [0, 24], sizes = [3, 8], strides = [1, 1]} : vector<3x32xf32> to vector<3x8xf32>
    %336 = arith.negf %335 : vector<3x8xf32>
    %337 = math.exp %336 : vector<3x8xf32>
    %cst_88 = arith.constant 1.000000e+00 : f32
    %338 = vector.broadcast %cst_88 : f32 to vector<3x8xf32>
    %339 = arith.addf %338, %337 : vector<3x8xf32>
    %340 = arith.divf %338, %339 : vector<3x8xf32>
    %341 = arith.mulf %332, %316 : vector<3x8xf32>
    %342 = arith.mulf %326, %334 : vector<3x8xf32>
    %343 = arith.addf %341, %342 : vector<3x8xf32>
    %344 = math.tanh %343 : vector<3x8xf32>
    %345 = arith.mulf %340, %344 : vector<3x8xf32>
    %cst_89 = arith.constant dense<0.000000e+00> : vector<3x32xf32>
    %346 = tpu.matmul %345, %4, %cst_89 {dimension_numbers = #tpu.dot_dimension_numbers<[1], [0], [0], [1], [0, 0, 1, 1], [], []>} : vector<3x8xf32>, vector<8x32xf32>, vector<3x32xf32> -> vector<3x32xf32>
    %347 = vector.broadcast %5 : vector<1x32xf32> to vector<3x32xf32>
    %348 = arith.addf %346, %347 : vector<3x32xf32>
    %c2 = arith.constant 2 : index
    %c0_90 = arith.constant 0 : index
    %c0_91 = arith.constant 0 : index
    %349 = vector.load %arg10[%c2, %c0_90, %c0_91] : memref<6x3x32xf32, #tpu.memory_space<vmem>>, vector<1x3x32xf32>
    %350 = vector.shape_cast %349 : vector<1x3x32xf32> to vector<3x32xf32>
    %351 = vector.shape_cast %348 : vector<3x32xf32> to vector<1x3x32xf32>
    tpu.vector_store %arg10[%c2, %c0_90, %c0_91], %351 {strides = array<i32>} : memref<6x3x32xf32, #tpu.memory_space<vmem>>, vector<1x3x32xf32>,
    %cst_92 = arith.constant dense<0xFF800000> : vector<3xf32>
    %352 = vector.multi_reduction <maximumf>, %348, %cst_92 [1] : vector<3x32xf32> to vector<3xf32>
    %353 = vector.shape_cast %352 : vector<3xf32> to vector<3x1xf32>
    %354 = tpu.iota {dimensions = array<i32: 1>} : vector<3x32xi32>
    %355 = vector.broadcast %353 : vector<3x1xf32> to vector<3x32xf32>
    %356 = arith.cmpf oeq, %348, %355 : vector<3x32xf32>
    %c32_i32_93 = arith.constant 32 : i32
    %357 = vector.broadcast %c32_i32_93 : i32 to vector<3x32xi32>
    %358 = arith.select %356, %354, %357 : vector<3x32xi1>, vector<3x32xi32>
    %cst_94 = arith.constant dense<2147483647> : vector<3xi32>
    %359 = vector.multi_reduction <minsi>, %358, %cst_94 [1] : vector<3x32xi32> to vector<3xi32>
    %360 = vector.shape_cast %359 : vector<3xi32> to vector<3x1xi32>
    %361 = tpu.iota {dimensions = array<i32: 1>} : vector<3x32xi32>
    %362 = vector.broadcast %360 : vector<3x1xi32> to vector<3x32xi32>
    %363 = arith.cmpi eq, %362, %361 : vector<3x32xi32>
    %364 = arith.extui %363 : vector<3x32xi1> to vector<3x32xi32>
    %365 = arith.sitofp %364 : vector<3x32xi32> to vector<3x32xf32>
    %cst_95 = arith.constant dense<0.000000e+00> : vector<3x16xf32>
    %366 = tpu.matmul %365, %0, %cst_95 {dimension_numbers = #tpu.dot_dimension_numbers<[1], [0], [0], [1], [0, 0, 1, 1], [], []>} : vector<3x32xf32>, vector<32x16xf32>, vector<3x16xf32> -> vector<3x16xf32>
    %cst_96 = arith.constant dense<0.000000e+00> : vector<3x32xf32>
    %367 = tpu.matmul %366, %1, %cst_96 {dimension_numbers = #tpu.dot_dimension_numbers<[1], [0], [0], [1], [0, 0, 1, 1], [], []>} : vector<3x16xf32>, vector<16x32xf32>, vector<3x32xf32> -> vector<3x32xf32>
    %368 = vector.broadcast %3 : vector<1x32xf32> to vector<3x32xf32>
    %369 = arith.addf %367, %368 : vector<3x32xf32>
    %370 = vector.extract_strided_slice %369 {offsets = [0, 0], sizes = [3, 8], strides = [1, 1]} : vector<3x32xf32> to vector<3x8xf32>
    %371 = arith.negf %370 : vector<3x8xf32>
    %372 = math.exp %371 : vector<3x8xf32>
    %cst_97 = arith.constant 1.000000e+00 : f32
    %373 = vector.broadcast %cst_97 : f32 to vector<3x8xf32>
    %374 = arith.addf %373, %372 : vector<3x8xf32>
    %375 = arith.divf %373, %374 : vector<3x8xf32>
    %376 = vector.extract_strided_slice %369 {offsets = [0, 16], sizes = [3, 8], strides = [1, 1]} : vector<3x32xf32> to vector<3x8xf32>
    %377 = math.tanh %376 : vector<3x8xf32>
    %378 = vector.extract_strided_slice %369 {offsets = [0, 24], sizes = [3, 8], strides = [1, 1]} : vector<3x32xf32> to vector<3x8xf32>
    %379 = arith.negf %378 : vector<3x8xf32>
    %380 = math.exp %379 : vector<3x8xf32>
    %cst_98 = arith.constant 1.000000e+00 : f32
    %381 = vector.broadcast %cst_98 : f32 to vector<3x8xf32>
    %382 = arith.addf %381, %380 : vector<3x8xf32>
    %383 = arith.divf %381, %382 : vector<3x8xf32>
    %384 = arith.mulf %375, %377 : vector<3x8xf32>
    %385 = math.tanh %384 : vector<3x8xf32>
    %386 = arith.mulf %383, %385 : vector<3x8xf32>
    %cst_99 = arith.constant dense<0.000000e+00> : vector<3x32xf32>
    %387 = tpu.matmul %386, %2, %cst_99 {dimension_numbers = #tpu.dot_dimension_numbers<[1], [0], [0], [1], [0, 0, 1, 1], [], []>} : vector<3x8xf32>, vector<8x32xf32>, vector<3x32xf32> -> vector<3x32xf32>
    %388 = arith.addf %219, %387 : vector<3x32xf32>
    %389 = vector.extract_strided_slice %388 {offsets = [0, 0], sizes = [3, 8], strides = [1, 1]} : vector<3x32xf32> to vector<3x8xf32>
    %390 = arith.negf %389 : vector<3x8xf32>
    %391 = math.exp %390 : vector<3x8xf32>
    %cst_100 = arith.constant 1.000000e+00 : f32
    %392 = vector.broadcast %cst_100 : f32 to vector<3x8xf32>
    %393 = arith.addf %392, %391 : vector<3x8xf32>
    %394 = arith.divf %392, %393 : vector<3x8xf32>
    %395 = vector.extract_strided_slice %388 {offsets = [0, 8], sizes = [3, 8], strides = [1, 1]} : vector<3x32xf32> to vector<3x8xf32>
    %396 = arith.negf %395 : vector<3x8xf32>
    %397 = math.exp %396 : vector<3x8xf32>
    %cst_101 = arith.constant 1.000000e+00 : f32
    %398 = vector.broadcast %cst_101 : f32 to vector<3x8xf32>
    %399 = arith.addf %398, %397 : vector<3x8xf32>
    %400 = arith.divf %398, %399 : vector<3x8xf32>
    %401 = vector.extract_strided_slice %388 {offsets = [0, 16], sizes = [3, 8], strides = [1, 1]} : vector<3x32xf32> to vector<3x8xf32>
    %402 = math.tanh %401 : vector<3x8xf32>
    %403 = vector.extract_strided_slice %388 {offsets = [0, 24], sizes = [3, 8], strides = [1, 1]} : vector<3x32xf32> to vector<3x8xf32>
    %404 = arith.negf %403 : vector<3x8xf32>
    %405 = math.exp %404 : vector<3x8xf32>
    %cst_102 = arith.constant 1.000000e+00 : f32
    %406 = vector.broadcast %cst_102 : f32 to vector<3x8xf32>
    %407 = arith.addf %406, %405 : vector<3x8xf32>
    %408 = arith.divf %406, %407 : vector<3x8xf32>
    %409 = arith.mulf %400, %384 : vector<3x8xf32>
    %410 = arith.mulf %394, %402 : vector<3x8xf32>
    %411 = arith.addf %409, %410 : vector<3x8xf32>
    %412 = math.tanh %411 : vector<3x8xf32>
    %413 = arith.mulf %408, %412 : vector<3x8xf32>
    %cst_103 = arith.constant dense<0.000000e+00> : vector<3x32xf32>
    %414 = tpu.matmul %413, %4, %cst_103 {dimension_numbers = #tpu.dot_dimension_numbers<[1], [0], [0], [1], [0, 0, 1, 1], [], []>} : vector<3x8xf32>, vector<8x32xf32>, vector<3x32xf32> -> vector<3x32xf32>
    %415 = vector.broadcast %5 : vector<1x32xf32> to vector<3x32xf32>
    %416 = arith.addf %414, %415 : vector<3x32xf32>
    %c3 = arith.constant 3 : index
    %c0_104 = arith.constant 0 : index
    %c0_105 = arith.constant 0 : index
    %417 = vector.load %arg10[%c3, %c0_104, %c0_105] : memref<6x3x32xf32, #tpu.memory_space<vmem>>, vector<1x3x32xf32>
    %418 = vector.shape_cast %417 : vector<1x3x32xf32> to vector<3x32xf32>
    %419 = vector.shape_cast %416 : vector<3x32xf32> to vector<1x3x32xf32>
    tpu.vector_store %arg10[%c3, %c0_104, %c0_105], %419 {strides = array<i32>} : memref<6x3x32xf32, #tpu.memory_space<vmem>>, vector<1x3x32xf32>,
    %cst_106 = arith.constant dense<0xFF800000> : vector<3xf32>
    %420 = vector.multi_reduction <maximumf>, %416, %cst_106 [1] : vector<3x32xf32> to vector<3xf32>
    %421 = vector.shape_cast %420 : vector<3xf32> to vector<3x1xf32>
    %422 = tpu.iota {dimensions = array<i32: 1>} : vector<3x32xi32>
    %423 = vector.broadcast %421 : vector<3x1xf32> to vector<3x32xf32>
    %424 = arith.cmpf oeq, %416, %423 : vector<3x32xf32>
    %c32_i32_107 = arith.constant 32 : i32
    %425 = vector.broadcast %c32_i32_107 : i32 to vector<3x32xi32>
    %426 = arith.select %424, %422, %425 : vector<3x32xi1>, vector<3x32xi32>
    %cst_108 = arith.constant dense<2147483647> : vector<3xi32>
    %427 = vector.multi_reduction <minsi>, %426, %cst_108 [1] : vector<3x32xi32> to vector<3xi32>
    %428 = vector.shape_cast %427 : vector<3xi32> to vector<3x1xi32>
    %429 = tpu.iota {dimensions = array<i32: 1>} : vector<3x32xi32>
    %430 = vector.broadcast %428 : vector<3x1xi32> to vector<3x32xi32>
    %431 = arith.cmpi eq, %430, %429 : vector<3x32xi32>
    %432 = arith.extui %431 : vector<3x32xi1> to vector<3x32xi32>
    %433 = arith.sitofp %432 : vector<3x32xi32> to vector<3x32xf32>
    %cst_109 = arith.constant dense<0.000000e+00> : vector<3x16xf32>
    %434 = tpu.matmul %433, %0, %cst_109 {dimension_numbers = #tpu.dot_dimension_numbers<[1], [0], [0], [1], [0, 0, 1, 1], [], []>} : vector<3x32xf32>, vector<32x16xf32>, vector<3x16xf32> -> vector<3x16xf32>
    %cst_110 = arith.constant dense<0.000000e+00> : vector<3x32xf32>
    %435 = tpu.matmul %434, %1, %cst_110 {dimension_numbers = #tpu.dot_dimension_numbers<[1], [0], [0], [1], [0, 0, 1, 1], [], []>} : vector<3x16xf32>, vector<16x32xf32>, vector<3x32xf32> -> vector<3x32xf32>
    %436 = vector.broadcast %3 : vector<1x32xf32> to vector<3x32xf32>
    %437 = arith.addf %435, %436 : vector<3x32xf32>
    %438 = vector.extract_strided_slice %437 {offsets = [0, 0], sizes = [3, 8], strides = [1, 1]} : vector<3x32xf32> to vector<3x8xf32>
    %439 = arith.negf %438 : vector<3x8xf32>
    %440 = math.exp %439 : vector<3x8xf32>
    %cst_111 = arith.constant 1.000000e+00 : f32
    %441 = vector.broadcast %cst_111 : f32 to vector<3x8xf32>
    %442 = arith.addf %441, %440 : vector<3x8xf32>
    %443 = arith.divf %441, %442 : vector<3x8xf32>
    %444 = vector.extract_strided_slice %437 {offsets = [0, 16], sizes = [3, 8], strides = [1, 1]} : vector<3x32xf32> to vector<3x8xf32>
    %445 = math.tanh %444 : vector<3x8xf32>
    %446 = vector.extract_strided_slice %437 {offsets = [0, 24], sizes = [3, 8], strides = [1, 1]} : vector<3x32xf32> to vector<3x8xf32>
    %447 = arith.negf %446 : vector<3x8xf32>
    %448 = math.exp %447 : vector<3x8xf32>
    %cst_112 = arith.constant 1.000000e+00 : f32
    %449 = vector.broadcast %cst_112 : f32 to vector<3x8xf32>
    %450 = arith.addf %449, %448 : vector<3x8xf32>
    %451 = arith.divf %449, %450 : vector<3x8xf32>
    %452 = arith.mulf %443, %445 : vector<3x8xf32>
    %453 = math.tanh %452 : vector<3x8xf32>
    %454 = arith.mulf %451, %453 : vector<3x8xf32>
    %cst_113 = arith.constant dense<0.000000e+00> : vector<3x32xf32>
    %455 = tpu.matmul %454, %2, %cst_113 {dimension_numbers = #tpu.dot_dimension_numbers<[1], [0], [0], [1], [0, 0, 1, 1], [], []>} : vector<3x8xf32>, vector<8x32xf32>, vector<3x32xf32> -> vector<3x32xf32>
    %456 = arith.addf %219, %455 : vector<3x32xf32>
    %457 = vector.extract_strided_slice %456 {offsets = [0, 0], sizes = [3, 8], strides = [1, 1]} : vector<3x32xf32> to vector<3x8xf32>
    %458 = arith.negf %457 : vector<3x8xf32>
    %459 = math.exp %458 : vector<3x8xf32>
    %cst_114 = arith.constant 1.000000e+00 : f32
    %460 = vector.broadcast %cst_114 : f32 to vector<3x8xf32>
    %461 = arith.addf %460, %459 : vector<3x8xf32>
    %462 = arith.divf %460, %461 : vector<3x8xf32>
    %463 = vector.extract_strided_slice %456 {offsets = [0, 8], sizes = [3, 8], strides = [1, 1]} : vector<3x32xf32> to vector<3x8xf32>
    %464 = arith.negf %463 : vector<3x8xf32>
    %465 = math.exp %464 : vector<3x8xf32>
    %cst_115 = arith.constant 1.000000e+00 : f32
    %466 = vector.broadcast %cst_115 : f32 to vector<3x8xf32>
    %467 = arith.addf %466, %465 : vector<3x8xf32>
    %468 = arith.divf %466, %467 : vector<3x8xf32>
    %469 = vector.extract_strided_slice %456 {offsets = [0, 16], sizes = [3, 8], strides = [1, 1]} : vector<3x32xf32> to vector<3x8xf32>
    %470 = math.tanh %469 : vector<3x8xf32>
    %471 = vector.extract_strided_slice %456 {offsets = [0, 24], sizes = [3, 8], strides = [1, 1]} : vector<3x32xf32> to vector<3x8xf32>
    %472 = arith.negf %471 : vector<3x8xf32>
    %473 = math.exp %472 : vector<3x8xf32>
    %cst_116 = arith.constant 1.000000e+00 : f32
    %474 = vector.broadcast %cst_116 : f32 to vector<3x8xf32>
    %475 = arith.addf %474, %473 : vector<3x8xf32>
    %476 = arith.divf %474, %475 : vector<3x8xf32>
    %477 = arith.mulf %468, %452 : vector<3x8xf32>
    %478 = arith.mulf %462, %470 : vector<3x8xf32>
    %479 = arith.addf %477, %478 : vector<3x8xf32>
    %480 = math.tanh %479 : vector<3x8xf32>
    %481 = arith.mulf %476, %480 : vector<3x8xf32>
    %cst_117 = arith.constant dense<0.000000e+00> : vector<3x32xf32>
    %482 = tpu.matmul %481, %4, %cst_117 {dimension_numbers = #tpu.dot_dimension_numbers<[1], [0], [0], [1], [0, 0, 1, 1], [], []>} : vector<3x8xf32>, vector<8x32xf32>, vector<3x32xf32> -> vector<3x32xf32>
    %483 = vector.broadcast %5 : vector<1x32xf32> to vector<3x32xf32>
    %484 = arith.addf %482, %483 : vector<3x32xf32>
    %c4_118 = arith.constant 4 : index
    %c0_119 = arith.constant 0 : index
    %c0_120 = arith.constant 0 : index
    %485 = vector.load %arg10[%c4_118, %c0_119, %c0_120] : memref<6x3x32xf32, #tpu.memory_space<vmem>>, vector<1x3x32xf32>
    %486 = vector.shape_cast %485 : vector<1x3x32xf32> to vector<3x32xf32>
    %487 = vector.shape_cast %484 : vector<3x32xf32> to vector<1x3x32xf32>
    tpu.vector_store %arg10[%c4_118, %c0_119, %c0_120], %487 {strides = array<i32>} : memref<6x3x32xf32, #tpu.memory_space<vmem>>, vector<1x3x32xf32>,
    %cst_121 = arith.constant dense<0xFF800000> : vector<3xf32>
    %488 = vector.multi_reduction <maximumf>, %484, %cst_121 [1] : vector<3x32xf32> to vector<3xf32>
    %489 = vector.shape_cast %488 : vector<3xf32> to vector<3x1xf32>
    %490 = tpu.iota {dimensions = array<i32: 1>} : vector<3x32xi32>
    %491 = vector.broadcast %489 : vector<3x1xf32> to vector<3x32xf32>
    %492 = arith.cmpf oeq, %484, %491 : vector<3x32xf32>
    %c32_i32_122 = arith.constant 32 : i32
    %493 = vector.broadcast %c32_i32_122 : i32 to vector<3x32xi32>
    %494 = arith.select %492, %490, %493 : vector<3x32xi1>, vector<3x32xi32>
    %cst_123 = arith.constant dense<2147483647> : vector<3xi32>
    %495 = vector.multi_reduction <minsi>, %494, %cst_123 [1] : vector<3x32xi32> to vector<3xi32>
    %496 = vector.shape_cast %495 : vector<3xi32> to vector<3x1xi32>
    %497 = tpu.iota {dimensions = array<i32: 1>} : vector<3x32xi32>
    %498 = vector.broadcast %496 : vector<3x1xi32> to vector<3x32xi32>
    %499 = arith.cmpi eq, %498, %497 : vector<3x32xi32>
    %500 = arith.extui %499 : vector<3x32xi1> to vector<3x32xi32>
    %501 = arith.sitofp %500 : vector<3x32xi32> to vector<3x32xf32>
    %cst_124 = arith.constant dense<0.000000e+00> : vector<3x16xf32>
    %502 = tpu.matmul %501, %0, %cst_124 {dimension_numbers = #tpu.dot_dimension_numbers<[1], [0], [0], [1], [0, 0, 1, 1], [], []>} : vector<3x32xf32>, vector<32x16xf32>, vector<3x16xf32> -> vector<3x16xf32>
    %cst_125 = arith.constant dense<0.000000e+00> : vector<3x32xf32>
    %503 = tpu.matmul %502, %1, %cst_125 {dimension_numbers = #tpu.dot_dimension_numbers<[1], [0], [0], [1], [0, 0, 1, 1], [], []>} : vector<3x16xf32>, vector<16x32xf32>, vector<3x32xf32> -> vector<3x32xf32>
    %504 = vector.broadcast %3 : vector<1x32xf32> to vector<3x32xf32>
    %505 = arith.addf %503, %504 : vector<3x32xf32>
    %506 = vector.extract_strided_slice %505 {offsets = [0, 0], sizes = [3, 8], strides = [1, 1]} : vector<3x32xf32> to vector<3x8xf32>
    %507 = arith.negf %506 : vector<3x8xf32>
    %508 = math.exp %507 : vector<3x8xf32>
    %cst_126 = arith.constant 1.000000e+00 : f32
    %509 = vector.broadcast %cst_126 : f32 to vector<3x8xf32>
    %510 = arith.addf %509, %508 : vector<3x8xf32>
    %511 = arith.divf %509, %510 : vector<3x8xf32>
    %512 = vector.extract_strided_slice %505 {offsets = [0, 16], sizes = [3, 8], strides = [1, 1]} : vector<3x32xf32> to vector<3x8xf32>
    %513 = math.tanh %512 : vector<3x8xf32>
    %514 = vector.extract_strided_slice %505 {offsets = [0, 24], sizes = [3, 8], strides = [1, 1]} : vector<3x32xf32> to vector<3x8xf32>
    %515 = arith.negf %514 : vector<3x8xf32>
    %516 = math.exp %515 : vector<3x8xf32>
    %cst_127 = arith.constant 1.000000e+00 : f32
    %517 = vector.broadcast %cst_127 : f32 to vector<3x8xf32>
    %518 = arith.addf %517, %516 : vector<3x8xf32>
    %519 = arith.divf %517, %518 : vector<3x8xf32>
    %520 = arith.mulf %511, %513 : vector<3x8xf32>
    %521 = math.tanh %520 : vector<3x8xf32>
    %522 = arith.mulf %519, %521 : vector<3x8xf32>
    %cst_128 = arith.constant dense<0.000000e+00> : vector<3x32xf32>
    %523 = tpu.matmul %522, %2, %cst_128 {dimension_numbers = #tpu.dot_dimension_numbers<[1], [0], [0], [1], [0, 0, 1, 1], [], []>} : vector<3x8xf32>, vector<8x32xf32>, vector<3x32xf32> -> vector<3x32xf32>
    %524 = arith.addf %219, %523 : vector<3x32xf32>
    %525 = vector.extract_strided_slice %524 {offsets = [0, 0], sizes = [3, 8], strides = [1, 1]} : vector<3x32xf32> to vector<3x8xf32>
    %526 = arith.negf %525 : vector<3x8xf32>
    %527 = math.exp %526 : vector<3x8xf32>
    %cst_129 = arith.constant 1.000000e+00 : f32
    %528 = vector.broadcast %cst_129 : f32 to vector<3x8xf32>
    %529 = arith.addf %528, %527 : vector<3x8xf32>
    %530 = arith.divf %528, %529 : vector<3x8xf32>
    %531 = vector.extract_strided_slice %524 {offsets = [0, 8], sizes = [3, 8], strides = [1, 1]} : vector<3x32xf32> to vector<3x8xf32>
    %532 = arith.negf %531 : vector<3x8xf32>
    %533 = math.exp %532 : vector<3x8xf32>
    %cst_130 = arith.constant 1.000000e+00 : f32
    %534 = vector.broadcast %cst_130 : f32 to vector<3x8xf32>
    %535 = arith.addf %534, %533 : vector<3x8xf32>
    %536 = arith.divf %534, %535 : vector<3x8xf32>
    %537 = vector.extract_strided_slice %524 {offsets = [0, 16], sizes = [3, 8], strides = [1, 1]} : vector<3x32xf32> to vector<3x8xf32>
    %538 = math.tanh %537 : vector<3x8xf32>
    %539 = vector.extract_strided_slice %524 {offsets = [0, 24], sizes = [3, 8], strides = [1, 1]} : vector<3x32xf32> to vector<3x8xf32>
    %540 = arith.negf %539 : vector<3x8xf32>
    %541 = math.exp %540 : vector<3x8xf32>
    %cst_131 = arith.constant 1.000000e+00 : f32
    %542 = vector.broadcast %cst_131 : f32 to vector<3x8xf32>
    %543 = arith.addf %542, %541 : vector<3x8xf32>
    %544 = arith.divf %542, %543 : vector<3x8xf32>
    %545 = arith.mulf %536, %520 : vector<3x8xf32>
    %546 = arith.mulf %530, %538 : vector<3x8xf32>
    %547 = arith.addf %545, %546 : vector<3x8xf32>
    %548 = math.tanh %547 : vector<3x8xf32>
    %549 = arith.mulf %544, %548 : vector<3x8xf32>
    %cst_132 = arith.constant dense<0.000000e+00> : vector<3x32xf32>
    %550 = tpu.matmul %549, %4, %cst_132 {dimension_numbers = #tpu.dot_dimension_numbers<[1], [0], [0], [1], [0, 0, 1, 1], [], []>} : vector<3x8xf32>, vector<8x32xf32>, vector<3x32xf32> -> vector<3x32xf32>
    %551 = vector.broadcast %5 : vector<1x32xf32> to vector<3x32xf32>
    %552 = arith.addf %550, %551 : vector<3x32xf32>
    %c5 = arith.constant 5 : index
    %c0_133 = arith.constant 0 : index
    %c0_134 = arith.constant 0 : index
    %553 = vector.load %arg10[%c5, %c0_133, %c0_134] : memref<6x3x32xf32, #tpu.memory_space<vmem>>, vector<1x3x32xf32>
    %554 = vector.shape_cast %553 : vector<1x3x32xf32> to vector<3x32xf32>
    %555 = vector.shape_cast %552 : vector<3x32xf32> to vector<1x3x32xf32>
    tpu.vector_store %arg10[%c5, %c0_133, %c0_134], %555 {strides = array<i32>} : memref<6x3x32xf32, #tpu.memory_space<vmem>>, vector<1x3x32xf32>,
    return
  }
}

</mosaic_0001>

<bundles_post_ra>
// kernel: vae_forward.1
= control target key start
LH: loop header
LB: loop body
LE: loop exit
PB: predicated region body
PF: predicated region fallthrough
CT: control target
= control target key end

     0   :  { %v3606_v2 = vmov 0   ;;  %s4134_s0 = inlined_call_operand.vmem [shape: s32[24,1], index: 0, kind: input, shape index: {}]   ;;  %s4135_s1 = inlined_call_operand.vmem [shape: f32[24,16], index: 1, kind: input, shape index: {}]   ;;  %s4136_s2 = inlined_call_operand.vmem [shape: f32[32,16], index: 2, kind: input, shape index: {}]   ;;  %s4137_s3 = inlined_call_operand.vmem [shape: f32[16,32], index: 3, kind: input, shape index: {}]   ;;  %s4138_s4 = inlined_call_operand.vmem [shape: f32[8,32], index: 4, kind: input, shape index: {}]   ;;  %s4139_s5 = inlined_call_operand.vmem [shape: f32[1,32], index: 5, kind: input, shape index: {}]   ;;  %s4140_s6 = inlined_call_operand.vmem [shape: f32[8,32], index: 6, kind: input, shape index: {}]   ;;  %s4141_s7 = inlined_call_operand.vmem [shape: f32[1,32], index: 7, kind: input, shape index: {}]   ;;  %s4142_s8 = inlined_call_operand.vmem [shape: f32[8,32], index: 8, kind: input, shape index: {}]   ;;  %s4143_s9 = inlined_call_operand.vmem [shape: f32[1,32], index: 9, kind: input, shape index: {}]   ;;  %s4144_s10 = inlined_call_operand.hbm [shape: f32[6,3,32], index: 10, kind: output, shape index: {0}]   ;;  %s4145_s11 = inlined_call_operand.vmem [shape: f32[24,16], index: 11, kind: output, shape index: {1}]   ;;  %s4146_s12 = inlined_call_operand.vmem [shape: f32[24,16], index: 12, kind: output, shape index: {2}]  }
   0x1   :  { %v49_v0 = vld [vmem:[%s4134_s0] sm:$0xff]  ;;  %v51_v1 = vld [vmem:[%s4134_s0 + $0x10] sm:$0xff]  ;;  %3436 = vset.pattern.permute.xlu0 %v3606_v2  ;;  %3437 = vset.pattern.permute.xlu1 %v3606_v2  ;;  %v40_v4 = vld [vmem:[%s4136_s2 + $0x8] sm:$0xff] }
   0x2   :  { %v39_v3 = vld [vmem:[%s4136_s2] sm:$0xff]  ;;  %v41_v5 = vld [vmem:[%s4136_s2 + $0x10] sm:$0xff]  ;;  %55 = vperm.xlu0 %3436, %v49_v0   ;;  %61 = vperm.xlu1 %3437, %v51_v1   ;;  %v42_v7 = vld [vmem:[%s4136_s2 + $0x18] sm:$0xff] }
   0x3   :  { %v3698_v6 = vpack.c.bf16 %v40_v4, %v39_v3 }
   0x4   :  { %18 = vsyncpa [#allocation4], 0  ;;  %v50_v8 = vld [vmem:[%s4134_s0 + $0x8] sm:$0xff]  ;;  %v3607_v9 = vmov 0.0|0.0   ;;  %vm3608_vm0 = vmmov 0   ;;  %v3609_v10 = vmov 0.0   ;;  %v3710_v11 = vpack.c.bf16 %v42_v7, %v41_v5 }
   0x5   :  { %3367 = vmatprep.subr.bf16.mxu0 %v3607_v9  ;;  %3157 = vmatprep.mubr.msk.f32.mxu0 %vm3608_vm0, %v3609_v10  ;;  %v43_v12 = vld [vmem:[%s4137_s3] sm:$0xff]  ;;  %v44_v13 = vld [vmem:[%s4137_s3 + $0x8] sm:$0xff]  ;;  %v52_v15 = vlaneseq  ;;  %vm72_vm1 = vcmask 261120   ;;  %vm168_vm5 = vcmask 130048   ;;  %s3610_s22 = smov 112   ;;  %s3611_s23 = smov 8  }
   0x6   :  { %3369 = vmatpush3.bf16.msra.mxu0 %v3698_v6  ;;  %3373 = vmatprep.subr.bf16.mxu1 %v3607_v9  ;;  %v3724_v14 = vpack.c.bf16 %v44_v13, %v43_v12  ;;  %v3751_v23 = vld [vmem:[%s4138_s4] sm:$0xff]  ;;  %s3612_s24 = smov 16   ;;  %s3613_s25 = smov 104   ;;  %vm361_vm6 = vcmask 60416   ;;  %vm258_vm7 = vcmask 64512   ;;  %vm470_vm8 = vcmask 64516  }
   0x7   :  { %3370 = vmatprep.subr.bf16.mxu0 %v3607_v9  ;;  %3170 = vmatprep.mubr.msk.f32.mxu1 %vm3608_vm0, %v3609_v10  ;;  %v3728_v16 = vand.u32 127, %v52_v15  ;;  %v3776_v34 = vld [vmem:[%s4139_s5] ss:$0 sm:$0xff]  ;;  %vm1151_vm10 = vcmask 256000  }
   0x8   :  { %58 = vperm.xlu0 %3436, %v50_v8   ;;  %3375 = vmatpush3.bf16.msra.mxu1 %v3724_v14  ;;  %1152 = vst.msk [vmem:[#allocation3] sm:$0x7] %vm1151_vm10, %v3609_v10 }
   0x9   :  { %3179 = vmatprep.subr.mxu1 %v3609_v10 }
   0xa   :  { %3372 = vmatpush3.bf16.msra.mxu0 %v3710_v11 }
   0xb   :  { %3184 = vmatprep.subr.mxu0 %v3609_v10 }
  0x81   :  { %v56_v17 = vpop.permute.xlu0 %55  ;;  %v62_v19 = vpop.permute.xlu1 %61 }
  0x82   :  { %vm63_vm2 = vcmp.eq.s32.totalorder %v56_v17, %v3728_v16  ;;  %vm65_vm4 = vcmp.eq.s32.totalorder %v62_v19, %v3728_v16 }
  0x83   :  { %v3732_v18 = vsel %vm63_vm2, 1.0, %v3609_v10  ;;  %v2999_v22 = vsel %vm65_vm4, 1.0, %v3609_v10 }
  0x84   :  { %3158 = vmatmul.mubr.msk.f32.vlgmr.msra.gmra.mrb[0].mxu0 %vm72_vm1, %v3732_v18 }
  0x85   :  { %3160 = vmatprep.mubr.msk.f32.mxu0 %vm3608_vm0, %v3609_v10  ;;  %3185 = vmatpush3.msra.mxu0 %v3751_v23 }
  0x86   :  { %3194 = vmatprep.subr.mxu0 %v3609_v10 }
  0x87   :  { %v59_v20 = vpop.permute.xlu0 %58 }
  0x88   :  { %vm64_vm3 = vcmp.eq.s32.totalorder %v59_v20, %v3728_v16 }
  0x89   :  { %v2998_v21 = vsel %vm64_vm3, 1.0, %v3609_v10 }
  0x8a   :  { %3161 = vmatmul.mubr.msk.f32.gmra.mrb[2].mxu0 %vm72_vm1, %v2998_v21 }
  0x8b   :  { %3163 = vmatprep.mubr.msk.f32.mxu0 %vm3608_vm0, %v3609_v10 }
  0x8e   :  { %3164 = vmatmul.mubr.msk.f32.gmra.mrb[4].mxu0 %vm72_vm1, %v2999_v22 }
  0x8f   :  { %3186 = vmatprep.mubr.msk.f32.mxu0 %vm3608_vm0, %v3609_v10 }
 0x157   :  { %v148_v24 = vpop.f32.mrb[0].mxu0 }
 0x158   :  { %v3159_v25 = vpop.f32.mrb[1].mxu0  ;;  %3171 = vmatmul.mubr.msk.f32.vlgmr.msra.gmra.mrb[0].mxu1 %vm168_vm5, %v148_v24 }
 0x159   :  { %3180 = vmatpush3.msra.mxu1 %v3751_v23  ;;  %3173 = vmatprep.mubr.msk.f32.mxu1 %vm3608_vm0, %v3609_v10 }
 0x15a   :  { %3189 = vmatprep.subr.mxu1 %v3609_v10 }
 0x15d   :  { %v153_v26 = vpop.f32.mrb[2].mxu0 }
 0x15e   :  { %v3162_v27 = vpop.f32.mrb[3].mxu0  ;;  %3174 = vmatmul.mubr.msk.f32.gmra.mrb[2].mxu1 %vm168_vm5, %v153_v26 }
 0x15f   :  { %3176 = vmatprep.mubr.msk.f32.mxu1 %vm3608_vm0, %v3609_v10 }
 0x161   :  { %v158_v28 = vpop.f32.mrb[4].mxu0 }
 0x162   :  { %v3165_v29 = vpop.f32.mrb[5].mxu0  ;;  %3177 = vmatmul.mubr.msk.f32.gmra.mrb[4].mxu1 %vm168_vm5, %v158_v28 }
 0x163   :  { %3181 = vmatprep.mubr.msk.f32.mxu1 %vm3608_vm0, %v3609_v10 }
 0x166   :  { %3182 = vmatmul.mubr.f32.vlgmr.msra.gmra.mrb[6].mxu1 %v3609_v10 }
 0x167   :  { %3190 = vmatpush3.msra.mxu1 %v3751_v23  ;;  %3191 = vmatprep.mubr.msk.f32.mxu1 %vm3608_vm0, %v3609_v10 }
 0x168   :  { %3199 = vmatprep.subr.mxu1 %v3609_v10 }
 0x22b   :  { %v244_v30 = vpop.f32.mrb[0].mxu1 }
 0x22c   :  { %v3172_v31 = vpop.f32.mrb[1].mxu1  ;;  %v245_v37 = vadd.f32 %v3776_v34, %v244_v30 }
 0x231   :  { %v3771_v32 = vpop.f32.mrb[2].mxu1 }
 0x232   :  { %v3175_v33 = vpop.f32.mrb[3].mxu1  ;;  %v250_v17 = vadd.f32 %v3776_v34, %v3771_v32 }
 0x235   :  { %v3778_v35 = vpop.f32.mrb[4].mxu1 }
 0x236   :  { %v3178_v36 = vpop.f32.mrb[5].mxu1 }
 0x239   :  { %v328_v38 = vpop.f32.mrb[6].mxu1 }
 0x23a   :  { %v332_v39 = vadd.f32 %v328_v38, %v245_v37  ;;  %v3183_v40 = vpop.f32.mrb[7].mxu1 }
 0x23c   :  { %3438 = vtanh.f32 %v332_v39  ;;  %v3007_v42 = vmul.f32 -1.442695, %v332_v39 }
 0x23e   :  { %3440 = vpow2.f32 %v3007_v42 }
 0x246   :  { %v3439_v41 = vpop.eup %3438 }
 0x247   :  { %342 = vrot.lane.b32.xlu1 %v3439_v41, %s3610_s22 }
 0x248   :  { %v3441_v43 = vpop.eup %3440 }
 0x249   :  { %v336_v44 = vadd.f32 1.0, %v3441_v43 }
 0x24b   :  { %3442 = vrcp.f32 %v336_v44 }
 0x255   :  { %v3443_v45 = vpop.eup %3442 }
 0x256   :  { %v340_v48 = vmul.f32 0.0, %v3443_v45 }
 0x2b9   :  { %v343_v46 = vpop.permute.xlu1 %342 }
 0x2ba   :  { %v345_v47 = vmul.f32 %v3443_v45, %v343_v46 }
 0x2bc   :  { %347 = vrot.lane.b32.xlu0 %v345_v47, %s3611_s23 }
 0x32e   :  { %v348_v49 = vpop.permute.xlu0 %347 }
 0x32f   :  { %v350_v50 = vadd.f32 %v348_v49, %v340_v48 }
 0x331   :  { %3444 = vtanh.f32 %v350_v50  ;;  %v447_v2 = vrot.slane %v350_v50, 4 }
 0x33b   :  { %v3445_v51 = vpop.eup %3444 }
 0x33c   :  { %353 = vrot.lane.b32.xlu1 %v3445_v51, %s3612_s24 }
 0x3ae   :  { %v354_v52 = vpop.permute.xlu1 %353 }
 0x3af   :  { %v356_v53 = vmul.f32 %v3443_v45, %v354_v52 }
 0x3b1   :  { %358 = vrot.lane.b32.xlu0 %v356_v53, %s3613_s25 }
 0x423   :  { %v359_v54 = vpop.permute.xlu0 %358 }
 0x424   :  { %362 = vst.msk [vmem:[#allocation2] sm:$0xf] %vm361_vm6, %v359_v54  ;;  %3187 = vmatmul.mubr.msk.f32.vlgmr.msra.gmra.mrb[6].mxu0 %vm258_vm7, %v359_v54 }
 0x425   :  { %3195 = vmatpush3.msra.mxu0 %v3751_v23  ;;  %3196 = vmatprep.mubr.msk.f32.mxu0 %vm3608_vm0, %v3609_v10 }
 0x426   :  { %3204 = vmatprep.subr.mxu0 %v3609_v10 }
 0x4f7   :  { %v431_v55 = vpop.f32.mrb[6].mxu0 }
 0x4f8   :  { %v436_v56 = vrot.slane %v431_v55, 4  ;;  %v3188_v57 = vpop.f32.mrb[7].mxu0 }
 0x4fa   :  { %v438_v58 = vadd.f32 %v436_v56, %v245_v37 }
 0x4fc   :  { %3446 = vtanh.f32 %v438_v58  ;;  %v3009_v60 = vmul.f32 -1.442695, %v438_v58 }
 0x4fe   :  { %3448 = vpow2.f32 %v3009_v60  ;;  %v255_v60 = vadd.f32 %v3776_v34, %v3778_v35 }
 0x506   :  { %v3447_v59 = vpop.eup %3446 }
 0x507   :  { %451 = vrot.lane.b32.xlu1 %v3447_v59, %s3610_s22 }
 0x508   :  { %v3449_v61 = vpop.eup %3448 }
 0x509   :  { %v442_v62 = vadd.f32 1.0, %v3449_v61 }
 0x50b   :  { %3450 = vrcp.f32 %v442_v62 }
 0x515   :  { %v3451_v63 = vpop.eup %3450 }
 0x516   :  { %v449_v3 = vmul.f32 %v3451_v63, %v447_v2 }
 0x579   :  { %v452_v0 = vpop.permute.xlu1 %451 }
 0x57a   :  { %v454_v1 = vmul.f32 %v3451_v63, %v452_v0 }
 0x57c   :  { %456 = vrot.lane.b32.xlu0 %v454_v1, %s3611_s23 }
 0x5ee   :  { %v457_v4 = vpop.permute.xlu0 %456 }
 0x5ef   :  { %v459_v5 = vadd.f32 %v457_v4, %v449_v3 }
 0x5f1   :  { %3452 = vtanh.f32 %v459_v5  ;;  %v556_v30 = vrot.slane %v459_v5, 4 }
 0x5fb   :  { %v3453_v7 = vpop.eup %3452 }
 0x5fc   :  { %462 = vrot.lane.b32.xlu1 %v3453_v7, %s3612_s24 }
 0x66e   :  { %v463_v8 = vpop.permute.xlu1 %462 }
 0x66f   :  { %v3794_v12 = vmul.f32 %v3451_v63, %v463_v8 }
 0x671   :  { %v472_v13 = vrot.slane %v3794_v12, 4 }
 0x673   :  { %473 = vrot.lane.b32.xlu0 %v472_v13, %s3613_s25 }
 0x6e5   :  { %v474_v15 = vpop.permute.xlu0 %473 }
 0x6e6   :  { %3192 = vmatmul.mubr.msk.f32.vlgmr.msra.gmra.mrb[8].mxu1 %vm258_vm7, %v474_v15 }
 0x6e7   :  { %3200 = vmatpush3.msra.mxu1 %v3751_v23  ;;  %3201 = vmatprep.mubr.msk.f32.mxu1 %vm3608_vm0, %v3609_v10 }
 0x6e8   :  { %3209 = vmatprep.subr.mxu1 %v3609_v10 }
 0x7b9   :  { %v543_v19 = vpop.f32.mrb[8].mxu1 }
 0x7ba   :  { %v547_v20 = vadd.f32 %v543_v19, %v250_v17  ;;  %v3193_v21 = vpop.f32.mrb[9].mxu1 }
 0x7bc   :  { %3454 = vtanh.f32 %v547_v20  ;;  %v3011_v24 = vmul.f32 -1.442695, %v547_v20 }
 0x7be   :  { %3456 = vpow2.f32 %v3011_v24 }
 0x7c6   :  { %v3455_v22 = vpop.eup %3454 }
 0x7c7   :  { %560 = vrot.lane.b32.xlu1 %v3455_v22, %s3610_s22 }
 0x7c8   :  { %v3457_v25 = vpop.eup %3456 }
 0x7c9   :  { %v551_v26 = vadd.f32 1.0, %v3457_v25 }
 0x7cb   :  { %3458 = vrcp.f32 %v551_v26 }
 0x7d5   :  { %v3459_v27 = vpop.eup %3458 }
 0x7d6   :  { %v558_v31 = vmul.f32 %v3459_v27, %v556_v30 }
 0x839   :  { %v561_v28 = vpop.permute.xlu1 %560 }
 0x83a   :  { %v563_v29 = vmul.f32 %v3459_v27, %v561_v28 }
 0x83c   :  { %565 = vrot.lane.b32.xlu0 %v563_v29, %s3611_s23 }
 0x8ae   :  { %v566_v32 = vpop.permute.xlu0 %565 }
 0x8af   :  { %v568_v33 = vadd.f32 %v566_v32, %v558_v31  ;;  %v907_v31 = vld [vmem:[%s4140_s6] sm:$0xff] }
 0x8b1   :  { %3460 = vtanh.f32 %v568_v33  ;;  %v664_v51 = vrot.slane %v568_v33, 4 }
 0x8bb   :  { %v3461_v36 = vpop.eup %3460 }
 0x8bc   :  { %571 = vrot.lane.b32.xlu1 %v3461_v36, %s3612_s24 }
 0x92e   :  { %v572_v37 = vpop.permute.xlu1 %571 }
 0x92f   :  { %v574_v38 = vmul.f32 %v3459_v27, %v572_v37 }
 0x931   :  { %576 = vrot.lane.b32.xlu0 %v574_v38, %s3613_s25 }
 0x9a3   :  { %v577_v39 = vpop.permute.xlu0 %576 }
 0x9a4   :  { %579 = vst.msk [vmem:[#allocation2 + $0x8] sm:$0xf] %vm361_vm6, %v577_v39  ;;  %3197 = vmatmul.mubr.msk.f32.vlgmr.msra.gmra.mrb[8].mxu0 %vm258_vm7, %v577_v39 }
 0x9a5   :  { %3205 = vmatpush3.msra.mxu0 %v3751_v23  ;;  %3206 = vmatprep.mubr.msk.f32.mxu0 %vm3608_vm0, %v3609_v10 }
 0x9a6   :  { %3376 = vmatprep.subr.bf16.mxu0 %v3607_v9 }
 0xa77   :  { %v648_v40 = vpop.f32.mrb[8].mxu0 }
 0xa78   :  { %v653_v41 = vrot.slane %v648_v40, 4  ;;  %v3198_v42 = vpop.f32.mrb[9].mxu0 }
 0xa7a   :  { %v655_v43 = vadd.f32 %v653_v41, %v250_v17 }
 0xa7c   :  { %3462 = vtanh.f32 %v655_v43  ;;  %v3013_v45 = vmul.f32 -1.442695, %v655_v43 }
 0xa7e   :  { %3464 = vpow2.f32 %v3013_v45 }
 0xa86   :  { %v3463_v44 = vpop.eup %3462 }
 0xa87   :  { %668 = vrot.lane.b32.xlu1 %v3463_v44, %s3610_s22 }
 0xa88   :  { %v3465_v46 = vpop.eup %3464 }
 0xa89   :  { %v659_v47 = vadd.f32 1.0, %v3465_v46 }
 0xa8b   :  { %3466 = vrcp.f32 %v659_v47  ;;  %v3018_v47 = vld [vmem:[%s4141_s7] ss:$0 sm:$0xff] }
 0xa95   :  { %v3467_v48 = vpop.eup %3466 }
 0xa96   :  { %v666_v52 = vmul.f32 %v3467_v48, %v664_v51 }
 0xaf9   :  { %v669_v49 = vpop.permute.xlu1 %668 }
 0xafa   :  { %v671_v50 = vmul.f32 %v3467_v48, %v669_v49 }
 0xafc   :  { %673 = vrot.lane.b32.xlu0 %v671_v50, %s3611_s23 }
 0xb6e   :  { %v674_v53 = vpop.permute.xlu0 %673 }
 0xb6f   :  { %v676_v54 = vadd.f32 %v674_v53, %v666_v52 }
 0xb71   :  { %3468 = vtanh.f32 %v676_v54  ;;  %v772_v8 = vrot.slane %v676_v54, 4 }
 0xb7b   :  { %v3469_v55 = vpop.eup %3468 }
 0xb7c   :  { %679 = vrot.lane.b32.xlu1 %v3469_v55, %s3612_s24 }
 0xbee   :  { %v680_v56 = vpop.permute.xlu1 %679 }
 0xbef   :  { %v3818_v57 = vmul.f32 %v3467_v48, %v680_v56 }
 0xbf1   :  { %v688_v58 = vrot.slane %v3818_v57, 4 }
 0xbf3   :  { %689 = vrot.lane.b32.xlu0 %v688_v58, %s3613_s25 }
 0xc65   :  { %v690_v59 = vpop.permute.xlu0 %689 }
 0xc66   :  { %3202 = vmatmul.mubr.msk.f32.vlgmr.msra.gmra.mrb[10].mxu1 %vm258_vm7, %v690_v59 }
 0xc67   :  { %3211 = vmatprep.mubr.msk.f32.mxu1 %vm3608_vm0, %v3609_v10  ;;  %3210 = vmatpush3.msra.mxu1 %v907_v31 }
 0xc68   :  { %3385 = vmatprep.subr.bf16.mxu1 %v3607_v9 }
 0xd39   :  { %v759_v61 = vpop.f32.mrb[10].mxu1 }
 0xd3a   :  { %v763_v62 = vadd.f32 %v759_v61, %v255_v60  ;;  %v3203_v63 = vpop.f32.mrb[11].mxu1 }
 0xd3c   :  { %3470 = vtanh.f32 %v763_v62  ;;  %v3015_v1 = vmul.f32 -1.442695, %v763_v62 }
 0xd3e   :  { %3472 = vpow2.f32 %v3015_v1 }
 0xd46   :  { %v3471_v0 = vpop.eup %3470 }
 0xd47   :  { %776 = vrot.lane.b32.xlu1 %v3471_v0, %s3610_s22 }
 0xd48   :  { %v3473_v2 = vpop.eup %3472 }
 0xd49   :  { %v767_v3 = vadd.f32 1.0, %v3473_v2 }
 0xd4b   :  { %3474 = vrcp.f32 %v767_v3 }
 0xd55   :  { %v3475_v4 = vpop.eup %3474 }
 0xd56   :  { %v774_v13 = vmul.f32 %v3475_v4, %v772_v8 }
 0xdb9   :  { %v777_v5 = vpop.permute.xlu1 %776 }
 0xdba   :  { %v779_v7 = vmul.f32 %v3475_v4, %v777_v5 }
 0xdbc   :  { %781 = vrot.lane.b32.xlu0 %v779_v7, %s3611_s23 }
 0xe2e   :  { %v782_v35 = vpop.permute.xlu0 %781 }
 0xe2f   :  { %v784_v15 = vadd.f32 %v782_v35, %v774_v13 }
 0xe31   :  { %3476 = vtanh.f32 %v784_v15  ;;  %v880_v37 = vrot.slane %v784_v15, 4 }
 0xe3b   :  { %v3477_v17 = vpop.eup %3476 }
 0xe3c   :  { %787 = vrot.lane.b32.xlu1 %v3477_v17, %s3612_s24 }
 0xeae   :  { %v788_v19 = vpop.permute.xlu1 %787 }
 0xeaf   :  { %v790_v20 = vmul.f32 %v3475_v4, %v788_v19  ;;  %v1052_v19 = vld [vmem:[%s4135_s1 + $0x10] sm:$0xff]  ;;  %s3614_s1 = smov 24  }
 0xeb1   :  { %792 = vrot.lane.b32.xlu0 %v790_v20, %s3613_s25 }
 0xf23   :  { %v793_v21 = vpop.permute.xlu0 %792 }
 0xf24   :  { %795 = vst.msk [vmem:[#allocation2 + $0x10] sm:$0xf] %vm361_vm6, %v793_v21  ;;  %3207 = vmatmul.mubr.msk.f32.vlgmr.msra.gmra.mrb[10].mxu0 %vm258_vm7, %v793_v21 }
 0xf25   :  { %3378 = vmatpush3.bf16.msra.mxu0 %v3724_v14  ;;  %3224 = vmatprep.mubr.msk.f32.mxu0 %vm3608_vm0, %v3609_v10 }
 0xf26   :  { %3379 = vmatprep.subr.bf16.mxu0 %v3607_v9 }
 0xff7   :  { %v864_v22 = vpop.f32.mrb[10].mxu0 }
 0xff8   :  { %v869_v24 = vrot.slane %v864_v22, 4  ;;  %v3208_v25 = vpop.f32.mrb[11].mxu0 }
 0xffa   :  { %v871_v26 = vadd.f32 %v869_v24, %v255_v60 }
 0xffc   :  { %3478 = vtanh.f32 %v871_v26  ;;  %v3017_v28 = vmul.f32 -1.442695, %v871_v26 }
 0xffe   :  { %3480 = vpow2.f32 %v3017_v28 }
0x1006   :  { %v3479_v27 = vpop.eup %3478 }
0x1007   :  { %884 = vrot.lane.b32.xlu1 %v3479_v27, %s3610_s22 }
0x1008   :  { %v3481_v29 = vpop.eup %3480 }
0x1009   :  { %v875_v30 = vadd.f32 1.0, %v3481_v29 }
0x100b   :  { %3482 = vrcp.f32 %v875_v30 }
0x1015   :  { %v3483_v32 = vpop.eup %3482 }
0x1016   :  { %v882_v38 = vmul.f32 %v3483_v32, %v880_v37 }
0x1079   :  { %v885_v33 = vpop.permute.xlu1 %884 }
0x107a   :  { %v887_v36 = vmul.f32 %v3483_v32, %v885_v33 }
0x107c   :  { %889 = vrot.lane.b32.xlu0 %v887_v36, %s3611_s23 }
0x1080   :  { %467 = vrot.lane.b32.xlu0 %v3794_v12, %s3613_s25 }
0x10ee   :  { %v890_v39 = vpop.permute.xlu0 %889 }
0x10ef   :  { %v892_v40 = vadd.f32 %v890_v39, %v882_v38 }
0x10f1   :  { %3484 = vtanh.f32 %v892_v40 }
0x10f2   :  { %v468_v41 = vpop.permute.xlu0 %467 }
0x10f3   :  { %471 = vst.msk [vmem:[#allocation2] sm:$0xf0] %vm470_vm8, %v468_v41 }
0x10fa   :  { %v904_v42 = vld [vmem:[#allocation2] sm:$0xff] }
0x10fb   :  { %v3485_v43 = vpop.eup %3484  ;;  %3212 = vmatmul.mubr.msk.f32.vlgmr.msra.gmra.mrb[12].mxu1 %vm258_vm7, %v904_v42 }
0x10fc   :  { %895 = vrot.lane.b32.xlu1 %v3485_v43, %s3612_s24  ;;  %3214 = vmatprep.mubr.msk.f32.mxu1 %vm3608_vm0, %v3609_v10 }
0x10fd   :  { %3387 = vmatpush3.bf16.msra.mxu1 %v3724_v14 }
0x10fe   :  { %3250 = vmatprep.subr.mxu1 %v3609_v10 }
0x1100   :  { %684 = vrot.lane.b32.xlu1 %v3818_v57, %s3613_s25 }
0x116e   :  { %v896_v12 = vpop.permute.xlu1 %895 }
0x116f   :  { %v898_v44 = vmul.f32 %v3483_v32, %v896_v12 }
0x1171   :  { %900 = vrot.lane.b32.xlu0 %v898_v44, %s3613_s25 }
0x1172   :  { %v685_v45 = vpop.permute.xlu1 %684 }
0x1173   :  { %687 = vst.msk [vmem:[#allocation2 + $0x8] sm:$0xf0] %vm470_vm8, %v685_v45 }
0x117a   :  { %v905_v46 = vld [vmem:[#allocation2 + $0x8] sm:$0xff] }
0x117b   :  { %3215 = vmatmul.mubr.msk.f32.gmra.mrb[14].mxu1 %vm258_vm7, %v905_v46 }
0x117c   :  { %3217 = vmatprep.mubr.msk.f32.mxu1 %vm3608_vm0, %v3609_v10 }
0x11ce   :  { %v990_v48 = vpop.f32.mrb[12].mxu1 }
0x11cf   :  { %v3862_v49 = vadd.f32 %v3018_v47, %v990_v48  ;;  %v3213_v50 = vpop.f32.mrb[13].mxu1 }
0x11d1   :  { %1059 = vst.msk [vmem:[%s4145_s11] sm:$0xff] %vm168_vm5, %v3862_v49 }
0x11e3   :  { %v901_v51 = vpop.permute.xlu0 %900 }
0x11e4   :  { %903 = vst.msk [vmem:[#allocation2 + $0x10] sm:$0xf0] %vm470_vm8, %v901_v51 }
0x11eb   :  { %v906_v52 = vld [vmem:[#allocation2 + $0x10] sm:$0xff] }
0x11ec   :  { %3218 = vmatmul.mubr.msk.f32.gmra.mrb[16].mxu1 %vm258_vm7, %v906_v52 }
0x11ed   :  { %3242 = vmatprep.mubr.msk.f32.mxu1 %vm3608_vm0, %v3609_v10 }
0x124e   :  { %v995_v53 = vpop.f32.mrb[14].mxu1 }
0x124f   :  { %v3873_v54 = vadd.f32 %v3018_v47, %v995_v53  ;;  %v3216_v55 = vpop.f32.mrb[15].mxu1 }
0x1251   :  { %1060 = vst.msk [vmem:[%s4145_s11 + $0x8] sm:$0xff] %vm168_vm5, %v3873_v54 }
0x12bf   :  { %v1000_v56 = vpop.f32.mrb[16].mxu1 }
0x12c0   :  { %v1001_v57 = vadd.f32 %v3018_v47, %v1000_v56  ;;  %v3219_v58 = vpop.f32.mrb[17].mxu1 }
0x12c2   :  { %v1009_v59 = vand.u32 2147483647, %v1001_v57  ;;  %1061 = vst.msk [vmem:[%s4145_s11 + $0x10] sm:$0xff] %vm168_vm5, %v1001_v57  ;;  %v1006_v7 = vmax.f32 %v1001_v57, 0.0 }
0x12c4   :  { %v1012_v60 = vsub.f32 0.0, %v1009_v59 }
0x12c6   :  { %v1017_v61 = vmul.f32 1.442695, %v1012_v60  ;;  %v3928_v60 = vld [vmem:[%s4142_s8] sm:$0xff] }
0x12c8   :  { %3486 = vpow2.f32 %v1017_v61 }
0x12d2   :  { %v3487_v62 = vpop.eup %3486 }
0x12d3   :  { %v1037_v63 = vadd.f32 1.0, %v3487_v62  ;;  %v1040_v0 = vmul.f32 -0.5, %v3487_v62  ;;  %v1043_v2 = vand.u32 2147483647, %v3487_v62 }
0x12d5   :  { %3488 = vlog2.f32 %v1037_v63  ;;  %v1041_v1 = vadd.f32 1.0, %v1040_v0  ;;  %vm1044_vm9 = vcmp.lt.f32.partialorder %v1043_v2, 0.0004427343 }
0x12d7   :  { %v1042_v5 = vmul.f32 %v3487_v62, %v1041_v1  ;;  %v3944_v1 = vld [vmem:[%s4143_s9] ss:$0 sm:$0xff] }
0x12df   :  { %v3489_v3 = vpop.eup %3488 }
0x12e0   :  { %v1039_v4 = vmul.f32 0.6931472, %v3489_v3 }
0x12e2   :  { %v1045_v8 = vsel %vm1044_vm9, %v1042_v5, %v1039_v4 }
0x12e3   :  { %v3884_v13 = vadd.f32 %v1045_v8, %v1006_v7 }
0x12e5   :  { %v1049_v35 = vmul.f32 1.442695, %v3884_v13 }
0x12e7   :  { %3490 = vpow2.f32 %v1049_v35 }
0x12f1   :  { %v3491_v15 = vpop.eup %3490 }
0x12f2   :  { %v1051_v17 = vmul.f32 0.5, %v3491_v15 }
0x12f4   :  { %1054 = vrot.lane.b32.xlu1 %v1051_v17, %s3610_s22 }
0x1366   :  { %v1055_v20 = vpop.permute.xlu1 %1054 }
0x1367   :  { %v1057_v21 = vmul.f32 %v1055_v20, %v1052_v19 }
0x1369   :  { %v1058_v22 = vadd.f32 %v1057_v21, %v1001_v57 }
0x136b   :  { %v1078_v24 = vrot.slane %v1058_v22, 4 }
0x136d   :  { %3225 = vmatmul.mubr.msk.f32.vlgmr.msra.gmra.mrb[12].mxu0 %vm168_vm5, %v1078_v24 }
0x136e   :  { %3381 = vmatpush3.bf16.msra.mxu0 %v3698_v6  ;;  %3235 = vmatprep.mubr.msk.f32.mxu0 %vm3608_vm0, %v3609_v10 }
0x136f   :  { %3382 = vmatprep.subr.bf16.mxu0 %v3607_v9 }
0x1372   :  { %3384 = vmatpush3.bf16.msra.mxu0 %v3710_v11 }
0x1373   :  { %3245 = vmatprep.subr.mxu0 %v3609_v10 }
0x1375   :  { %3236 = vmatmul.mubr.msk.f32.vlgmr.msra.gmra.mrb[14].mxu0 %vm72_vm1, %v3732_v18 }
0x1376   :  { %3246 = vmatpush3.msra.mxu0 %v3751_v23  ;;  %3247 = vmatprep.mubr.msk.f32.mxu0 %vm3608_vm0, %v3609_v10 }
0x1377   :  { %3388 = vmatprep.subr.bf16.mxu0 %v3607_v9 }
0x1440   :  { %v1147_v25 = vpop.f32.mrb[12].mxu0 }
0x1441   :  { %v3226_v26 = vpop.f32.mrb[13].mxu0  ;;  %v3920_v12 = vadd.f32 %v3776_v34, %v1147_v25 }
0x1448   :  { %v1219_v27 = vpop.f32.mrb[14].mxu0 }
0x1449   :  { %v3237_v28 = vpop.f32.mrb[15].mxu0  ;;  %3243 = vmatmul.mubr.msk.f32.vlgmr.msra.gmra.mrb[18].mxu1 %vm168_vm5, %v1219_v27 }
0x144a   :  { %3252 = vmatprep.mubr.msk.f32.mxu1 %vm3608_vm0, %v3609_v10  ;;  %3251 = vmatpush3.msra.mxu1 %v3928_v60 }
0x144b   :  { %3394 = vmatprep.subr.bf16.mxu1 %v3607_v9 }
0x151c   :  { %v1292_v29 = vpop.f32.mrb[18].mxu1 }
0x151d   :  { %v1293_v30 = vadd.f32 %v3776_v34, %v1292_v29  ;;  %v3244_v18 = vpop.f32.mrb[19].mxu1 }
0x151f   :  { %3492 = vtanh.f32 %v1293_v30  ;;  %v3025_v32 = vmul.f32 -1.442695, %v1293_v30 }
0x1521   :  { %3494 = vpow2.f32 %v3025_v32 }
0x1529   :  { %v3493_v31 = vpop.eup %3492 }
0x152a   :  { %1304 = vrot.lane.b32.xlu0 %v3493_v31, %s3610_s22 }
0x152b   :  { %v3495_v33 = vpop.eup %3494 }
0x152c   :  { %v1299_v36 = vadd.f32 1.0, %v3495_v33 }
0x152e   :  { %3496 = vrcp.f32 %v1299_v36 }
0x1538   :  { %v3497_v37 = vpop.eup %3496 }
0x159c   :  { %v1305_v38 = vpop.permute.xlu0 %1304 }
0x159d   :  { %v1307_v39 = vmul.f32 %v3497_v37, %v1305_v38 }
0x159f   :  { %3498 = vtanh.f32 %v1307_v39 }
0x15a9   :  { %v3499_v40 = vpop.eup %3498 }
0x15aa   :  { %1310 = vrot.lane.b32.xlu1 %v3499_v40, %s3614_s1 }
0x161c   :  { %v1311_v41 = vpop.permute.xlu1 %1310 }
0x161d   :  { %v1313_v42 = vmul.f32 %v3497_v37, %v1311_v41 }
0x161f   :  { %1315 = vrot.lane.b32.xlu0 %v1313_v42, %s3613_s25 }
0x1623   :  { %1398 = vrot.lane.b32.xlu0 %v1307_v39, %s3611_s23 }
0x1691   :  { %v1316_v43 = vpop.permute.xlu0 %1315 }
0x1692   :  { %3248 = vmatmul.mubr.msk.f32.vlgmr.msra.gmra.mrb[16].mxu0 %vm258_vm7, %v1316_v43 }
0x1693   :  { %3390 = vmatpush3.bf16.msra.mxu0 %v3698_v6  ;;  %3263 = vmatprep.mubr.msk.f32.mxu0 %vm3608_vm0, %v3609_v10 }
0x1694   :  { %3391 = vmatprep.subr.bf16.mxu0 %v3607_v9 }
0x1695   :  { %v1399_v56 = vpop.permute.xlu0 %1398 }
0x1697   :  { %3393 = vmatpush3.bf16.msra.mxu0 %v3710_v11 }
0x1698   :  { %3278 = vmatprep.subr.mxu0 %v3609_v10 }
0x1765   :  { %v1385_v44 = vpop.f32.mrb[16].mxu0 }
0x1766   :  { %v1389_v45 = vadd.f32 %v1385_v44, %v3920_v12  ;;  %v3249_v46 = vpop.f32.mrb[17].mxu0 }
0x1768   :  { %3500 = vtanh.f32 %v1389_v45  ;;  %v3027_v48 = vmul.f32 -1.442695, %v1389_v45 }
0x176a   :  { %3502 = vpow2.f32 %v3027_v48 }
0x1772   :  { %v3501_v47 = vpop.eup %3500 }
0x1773   :  { %1403 = vrot.lane.b32.xlu1 %v3501_v47, %s3610_s22 }
0x1774   :  { %v3503_v50 = vpop.eup %3502 }
0x1775   :  { %v1393_v51 = vadd.f32 1.0, %v3503_v50 }
0x1777   :  { %3504 = vrcp.f32 %v1393_v51 }
0x1781   :  { %v3505_v52 = vpop.eup %3504 }
0x1782   :  { %v1401_v57 = vmul.f32 %v3505_v52, %v1399_v56 }
0x17e5   :  { %v1404_v53 = vpop.permute.xlu1 %1403 }
0x17e6   :  { %v1406_v55 = vmul.f32 %v3505_v52, %v1404_v53 }
0x17e8   :  { %1408 = vrot.lane.b32.xlu1 %v1406_v55, %s3611_s23 }
0x185a   :  { %v1409_v58 = vpop.permute.xlu1 %1408 }
0x185b   :  { %v1411_v59 = vadd.f32 %v1409_v58, %v1401_v57 }
0x185d   :  { %3506 = vtanh.f32 %v1411_v59 }
0x1867   :  { %v3507_v61 = vpop.eup %3506 }
0x1868   :  { %1414 = vrot.lane.b32.xlu0 %v3507_v61, %s3612_s24 }
0x18da   :  { %v1415_v62 = vpop.permute.xlu0 %1414 }
0x18db   :  { %v1417_v63 = vmul.f32 %v3505_v52, %v1415_v62 }
0x18dd   :  { %1425 = vrot.lane.b32.xlu1 %v1417_v63, %s3613_s25 }
0x194f   :  { %v1426_v0 = vpop.permute.xlu1 %1425 }
0x1950   :  { %3253 = vmatmul.mubr.msk.f32.vlgmr.msra.gmra.mrb[20].mxu1 %vm258_vm7, %v1426_v0 }
0x1951   :  { %3396 = vmatpush3.bf16.msra.mxu1 %v3724_v14  ;;  %3270 = vmatprep.mubr.msk.f32.mxu1 %vm3608_vm0, %v3609_v10 }
0x1952   :  { %3273 = vmatprep.subr.mxu1 %v3609_v10 }
0x1a23   :  { %v1495_v2 = vpop.f32.mrb[20].mxu1 }
0x1a24   :  { %v1496_v3 = vadd.f32 %v3944_v1, %v1495_v2  ;;  %v3254_v4 = vpop.f32.mrb[21].mxu1 }
0x1a26   :  { %1500 = vst.msk [vmem:[#allocation3 + $0x4] sm:$0x7] %vm1151_vm10, %v1496_v3  ;;  %v1501_v5 = vsel %vm1151_vm10, %v1496_v3, -inf }
0x1a27   :  { %1502 = vmax.xlane.f32.xlu0 %v1501_v5 }
0x1ab4   :  { %v1503_v7 = vpop.xlane.xlu0 %1502 }
0x1ab5   :  { %vm1504_vm11 = vcmp.eq.f32.partialorder %v1496_v3, %v1503_v7 }
0x1ab6   :  { %v1505_v8 = vsel %vm1504_vm11, %v3728_v16, 32 }
0x1ab7   :  { %v1506_v35 = vsel %vm1151_vm10, %v1505_v8, 2147483647 }
0x1ab8   :  { %v1508_v15 = vshra.s32 %v1506_v35, 16  ;;  %v1507_v19 = vand.u32 65535, %v1506_v35 }
0x1aba   :  { %v1510_v17 = vcvt.s32.f32 %v1508_v15  ;;  %v1509_v21 = vcvt.s32.f32 %v1507_v19 }
0x1abc   :  { %1511 = vmin.xlane.f32.xlu1 %v1510_v17 }
0x1b49   :  { %v1512_v20 = vpop.xlane.xlu1 %1511 }
0x1b4a   :  { %vm1513_vm12 = vcmp.eq.f32.partialorder %v1510_v17, %v1512_v20  ;;  %v1518_v24 = vcvt.f32.s32 %v1512_v20 }
0x1b4b   :  { %v1514_v22 = vsel %vm1513_vm12, %v1509_v21, inf }
0x1b4c   :  { %1515 = vmin.xlane.f32.xlu0 %v1514_v22  ;;  %v1519_v26 = vshll.u32 %v1518_v24, 16 }
0x1bd9   :  { %v1516_v25 = vpop.xlane.xlu0 %1515 }
0x1bda   :  { %v1517_v27 = vcvt.f32.s32 %v1516_v25 }
0x1bdc   :  { %v1520_v28 = vadd.s32 %v1519_v26, %v1517_v27 }
0x1bde   :  { %vm1521_vm13 = vcmp.eq.s32.totalorder %v1520_v28, %v3728_v16 }
0x1bdf   :  { %v3030_v29 = vsel %vm1521_vm13, 1.0, %v3609_v10 }
0x1be0   :  { %3264 = vmatmul.mubr.msk.f32.vlgmr.msra.gmra.mrb[18].mxu0 %vm72_vm1, %v3030_v29 }
0x1be1   :  { %3279 = vmatpush3.msra.mxu0 %v3928_v60  ;;  %3280 = vmatprep.mubr.msk.f32.mxu0 %vm3608_vm0, %v3609_v10 }
0x1be2   :  { %3403 = vmatprep.subr.bf16.mxu0 %v3607_v9 }
0x1cb3   :  { %v1593_v30 = vpop.f32.mrb[18].mxu0 }
0x1cb4   :  { %v3265_v18 = vpop.f32.mrb[19].mxu0  ;;  %3271 = vmatmul.mubr.msk.f32.vlgmr.msra.gmra.mrb[22].mxu1 %vm168_vm5, %v1593_v30 }
0x1cb5   :  { %3274 = vmatpush3.msra.mxu1 %v3751_v23  ;;  %3275 = vmatprep.mubr.msk.f32.mxu1 %vm3608_vm0, %v3609_v10 }
0x1cb6   :  { %3397 = vmatprep.subr.bf16.mxu1 %v3607_v9 }
0x1d87   :  { %v1666_v31 = vpop.f32.mrb[22].mxu1 }
0x1d88   :  { %v1667_v32 = vadd.f32 %v3776_v34, %v1666_v31  ;;  %v3272_v33 = vpop.f32.mrb[23].mxu1 }
0x1d8a   :  { %3508 = vtanh.f32 %v1667_v32  ;;  %v3033_v37 = vmul.f32 -1.442695, %v1667_v32 }
0x1d8c   :  { %3510 = vpow2.f32 %v3033_v37 }
0x1d94   :  { %v3509_v36 = vpop.eup %3508 }
0x1d95   :  { %1678 = vrot.lane.b32.xlu0 %v3509_v36, %s3610_s22 }
0x1d96   :  { %v3511_v38 = vpop.eup %3510 }
0x1d97   :  { %v1673_v39 = vadd.f32 1.0, %v3511_v38 }
0x1d99   :  { %3512 = vrcp.f32 %v1673_v39 }
0x1da3   :  { %v3513_v40 = vpop.eup %3512 }
0x1e07   :  { %v1679_v41 = vpop.permute.xlu0 %1678 }
0x1e08   :  { %v1681_v42 = vmul.f32 %v3513_v40, %v1679_v41 }
0x1e0a   :  { %3514 = vtanh.f32 %v1681_v42 }
0x1e14   :  { %v3515_v43 = vpop.eup %3514 }
0x1e15   :  { %1684 = vrot.lane.b32.xlu1 %v3515_v43, %s3614_s1 }
0x1e87   :  { %v1685_v44 = vpop.permute.xlu1 %1684 }
0x1e88   :  { %v1687_v45 = vmul.f32 %v3513_v40, %v1685_v44 }
0x1e8a   :  { %1689 = vrot.lane.b32.xlu1 %v1687_v45, %s3613_s25 }
0x1e8e   :  { %1772 = vrot.lane.b32.xlu1 %v1681_v42, %s3611_s23 }
0x1efc   :  { %v1690_v46 = vpop.permute.xlu1 %1689 }
0x1efd   :  { %3276 = vmatmul.mubr.msk.f32.vlgmr.msra.gmra.mrb[24].mxu1 %vm258_vm7, %v1690_v46 }
0x1efe   :  { %3399 = vmatpush3.bf16.msra.mxu1 %v3698_v6  ;;  %3291 = vmatprep.mubr.msk.f32.mxu1 %vm3608_vm0, %v3609_v10 }
0x1eff   :  { %3400 = vmatprep.subr.bf16.mxu1 %v3607_v9 }
0x1f00   :  { %v1773_v59 = vpop.permute.xlu1 %1772 }
0x1f02   :  { %3402 = vmatpush3.bf16.msra.mxu1 %v3710_v11 }
0x1f03   :  { %3306 = vmatprep.subr.mxu1 %v3609_v10 }
0x1fd0   :  { %v1759_v47 = vpop.f32.mrb[24].mxu1 }
0x1fd1   :  { %v1763_v48 = vadd.f32 %v1759_v47, %v3920_v12  ;;  %v3277_v50 = vpop.f32.mrb[25].mxu1 }
0x1fd3   :  { %3516 = vtanh.f32 %v1763_v48  ;;  %v3035_v52 = vmul.f32 -1.442695, %v1763_v48 }
0x1fd5   :  { %3518 = vpow2.f32 %v3035_v52 }
0x1fdd   :  { %v3517_v51 = vpop.eup %3516 }
0x1fde   :  { %1777 = vrot.lane.b32.xlu0 %v3517_v51, %s3610_s22 }
0x1fdf   :  { %v3519_v53 = vpop.eup %3518 }
0x1fe0   :  { %v1767_v55 = vadd.f32 1.0, %v3519_v53 }
0x1fe2   :  { %3520 = vrcp.f32 %v1767_v55 }
0x1fec   :  { %v3521_v56 = vpop.eup %3520 }
0x1fed   :  { %v1775_v61 = vmul.f32 %v3521_v56, %v1773_v59 }
0x2050   :  { %v1778_v57 = vpop.permute.xlu0 %1777 }
0x2051   :  { %v1780_v58 = vmul.f32 %v3521_v56, %v1778_v57 }
0x2053   :  { %1782 = vrot.lane.b32.xlu0 %v1780_v58, %s3611_s23 }
0x20c5   :  { %v1783_v62 = vpop.permute.xlu0 %1782 }
0x20c6   :  { %v1785_v63 = vadd.f32 %v1783_v62, %v1775_v61 }
0x20c8   :  { %3522 = vtanh.f32 %v1785_v63 }
0x20d2   :  { %v3523_v0 = vpop.eup %3522 }
0x20d3   :  { %1788 = vrot.lane.b32.xlu1 %v3523_v0, %s3612_s24 }
0x2145   :  { %v1789_v2 = vpop.permute.xlu1 %1788 }
0x2146   :  { %v1791_v3 = vmul.f32 %v3521_v56, %v1789_v2 }
0x2148   :  { %1793 = vrot.lane.b32.xlu0 %v1791_v3, %s3613_s25 }
0x21ba   :  { %v1794_v4 = vpop.permute.xlu0 %1793 }
0x21bb   :  { %3281 = vmatmul.mubr.msk.f32.vlgmr.msra.gmra.mrb[20].mxu0 %vm258_vm7, %v1794_v4 }
0x21bc   :  { %3405 = vmatpush3.bf16.msra.mxu0 %v3724_v14  ;;  %3298 = vmatprep.mubr.msk.f32.mxu0 %vm3608_vm0, %v3609_v10 }
0x21bd   :  { %3301 = vmatprep.subr.mxu0 %v3609_v10 }
0x228e   :  { %v1863_v5 = vpop.f32.mrb[20].mxu0 }
0x228f   :  { %v1864_v7 = vadd.f32 %v3944_v1, %v1863_v5  ;;  %v3282_v8 = vpop.f32.mrb[21].mxu0 }
0x2291   :  { %1868 = vst.msk [vmem:[#allocation3 + $0x8] sm:$0x7] %vm1151_vm10, %v1864_v7  ;;  %v1869_v35 = vsel %vm1151_vm10, %v1864_v7, -inf }
0x2292   :  { %1870 = vmax.xlane.f32.xlu1 %v1869_v35 }
0x231f   :  { %v1871_v15 = vpop.xlane.xlu1 %1870 }
0x2320   :  { %vm1872_vm14 = vcmp.eq.f32.partialorder %v1864_v7, %v1871_v15 }
0x2321   :  { %v1873_v17 = vsel %vm1872_vm14, %v3728_v16, 32 }
0x2322   :  { %v1874_v19 = vsel %vm1151_vm10, %v1873_v17, 2147483647 }
0x2323   :  { %v1876_v20 = vshra.s32 %v1874_v19, 16  ;;  %v1875_v22 = vand.u32 65535, %v1874_v19 }
0x2325   :  { %v1878_v21 = vcvt.s32.f32 %v1876_v20  ;;  %v1877_v25 = vcvt.s32.f32 %v1875_v22 }
0x2327   :  { %1879 = vmin.xlane.f32.xlu0 %v1878_v21 }
0x23b4   :  { %v1880_v24 = vpop.xlane.xlu0 %1879 }
0x23b5   :  { %vm1881_vm15 = vcmp.eq.f32.partialorder %v1878_v21, %v1880_v24  ;;  %v1886_v27 = vcvt.f32.s32 %v1880_v24 }
0x23b6   :  { %v1882_v26 = vsel %vm1881_vm15, %v1877_v25, inf }
0x23b7   :  { %1883 = vmin.xlane.f32.xlu0 %v1882_v26  ;;  %v1887_v29 = vshll.u32 %v1886_v27, 16 }
0x2444   :  { %v1884_v28 = vpop.xlane.xlu0 %1883 }
0x2445   :  { %v1885_v30 = vcvt.f32.s32 %v1884_v28 }
0x2447   :  { %v1888_v18 = vadd.s32 %v1887_v29, %v1885_v30 }
0x2449   :  { %vm1889_vm2 = vcmp.eq.s32.totalorder %v1888_v18, %v3728_v16 }
0x244a   :  { %v3037_v31 = vsel %vm1889_vm2, 1.0, %v3609_v10 }
0x244b   :  { %3292 = vmatmul.mubr.msk.f32.vlgmr.msra.gmra.mrb[26].mxu1 %vm72_vm1, %v3037_v31 }
0x244c   :  { %3307 = vmatpush3.msra.mxu1 %v3928_v60  ;;  %3308 = vmatprep.mubr.msk.f32.mxu1 %vm3608_vm0, %v3609_v10 }
0x244d   :  { %3412 = vmatprep.subr.bf16.mxu1 %v3607_v9 }
0x251e   :  { %v1961_v32 = vpop.f32.mrb[26].mxu1 }
0x251f   :  { %v3293_v33 = vpop.f32.mrb[27].mxu1  ;;  %3299 = vmatmul.mubr.msk.f32.vlgmr.msra.gmra.mrb[22].mxu0 %vm168_vm5, %v1961_v32 }
0x2520   :  { %3302 = vmatpush3.msra.mxu0 %v3751_v23  ;;  %3303 = vmatprep.mubr.msk.f32.mxu0 %vm3608_vm0, %v3609_v10 }
0x2521   :  { %3406 = vmatprep.subr.bf16.mxu0 %v3607_v9 }
0x25f2   :  { %v2034_v36 = vpop.f32.mrb[22].mxu0 }
0x25f3   :  { %v2035_v37 = vadd.f32 %v3776_v34, %v2034_v36  ;;  %v3300_v38 = vpop.f32.mrb[23].mxu0 }
0x25f5   :  { %3524 = vtanh.f32 %v2035_v37  ;;  %v3040_v40 = vmul.f32 -1.442695, %v2035_v37  ;;  %v4040_v37 = vld [vmem:[%s4138_s4] sm:$0xff] }
0x25f7   :  { %3526 = vpow2.f32 %v3040_v40 }
0x25ff   :  { %v3525_v39 = vpop.eup %3524 }
0x2600   :  { %2046 = vrot.lane.b32.xlu1 %v3525_v39, %s3610_s22  ;;  %v4049_v39 = vld [vmem:[%s4139_s5] ss:$0 sm:$0xff] }
0x2601   :  { %v3527_v41 = vpop.eup %3526 }
0x2602   :  { %v2041_v42 = vadd.f32 1.0, %v3527_v41 }
0x2604   :  { %3528 = vrcp.f32 %v2041_v42 }
0x260e   :  { %v3529_v43 = vpop.eup %3528 }
0x2672   :  { %v2047_v23 = vpop.permute.xlu1 %2046 }
0x2673   :  { %v2049_v44 = vmul.f32 %v3529_v43, %v2047_v23 }
0x2675   :  { %3530 = vtanh.f32 %v2049_v44 }
0x267f   :  { %v3531_v45 = vpop.eup %3530 }
0x2680   :  { %2052 = vrot.lane.b32.xlu0 %v3531_v45, %s3614_s1 }
0x2684   :  { %2140 = vrot.lane.b32.xlu0 %v2049_v44, %s3611_s23 }
0x26f2   :  { %v2053_v34 = vpop.permute.xlu0 %2052 }
0x26f3   :  { %v2055_v46 = vmul.f32 %v3529_v43, %v2053_v34 }
0x26f5   :  { %2057 = vrot.lane.b32.xlu1 %v2055_v46, %s3613_s25 }
0x26f6   :  { %v2141_v61 = vpop.permute.xlu0 %2140 }
0x2767   :  { %v2058_v47 = vpop.permute.xlu1 %2057 }
0x2768   :  { %3304 = vmatmul.mubr.msk.f32.vlgmr.msra.gmra.mrb[24].mxu0 %vm258_vm7, %v2058_v47 }
0x2769   :  { %3408 = vmatpush3.bf16.msra.mxu0 %v3698_v6  ;;  %3319 = vmatprep.mubr.msk.f32.mxu0 %vm3608_vm0, %v3609_v10 }
0x276a   :  { %3409 = vmatprep.subr.bf16.mxu0 %v3607_v9 }
0x276d   :  { %3411 = vmatpush3.bf16.msra.mxu0 %v3710_v11 }
0x276e   :  { %3334 = vmatprep.subr.mxu0 %v3609_v10 }
0x283b   :  { %v2127_v48 = vpop.f32.mrb[24].mxu0 }
0x283c   :  { %v2131_v50 = vadd.f32 %v2127_v48, %v3920_v12  ;;  %v3305_v51 = vpop.f32.mrb[25].mxu0 }
0x283e   :  { %3532 = vtanh.f32 %v2131_v50  ;;  %v3042_v53 = vmul.f32 -1.442695, %v2131_v50 }
0x2840   :  { %3534 = vpow2.f32 %v3042_v53 }
0x2848   :  { %v3533_v52 = vpop.eup %3532 }
0x2849   :  { %2145 = vrot.lane.b32.xlu1 %v3533_v52, %s3610_s22 }
0x284a   :  { %v3535_v55 = vpop.eup %3534 }
0x284b   :  { %v2135_v56 = vadd.f32 1.0, %v3535_v55 }
0x284d   :  { %3536 = vrcp.f32 %v2135_v56 }
0x2857   :  { %v3537_v57 = vpop.eup %3536 }
0x2858   :  { %v2143_v62 = vmul.f32 %v3537_v57, %v2141_v61 }
0x28bb   :  { %v2146_v58 = vpop.permute.xlu1 %2145 }
0x28bc   :  { %v2148_v59 = vmul.f32 %v3537_v57, %v2146_v58 }
0x28be   :  { %2150 = vrot.lane.b32.xlu1 %v2148_v59, %s3611_s23 }
0x2930   :  { %v2151_v63 = vpop.permute.xlu1 %2150 }
0x2931   :  { %v2153_v0 = vadd.f32 %v2151_v63, %v2143_v62 }
0x2933   :  { %3538 = vtanh.f32 %v2153_v0 }
0x293d   :  { %v3539_v2 = vpop.eup %3538 }
0x293e   :  { %2156 = vrot.lane.b32.xlu0 %v3539_v2, %s3612_s24 }
0x29b0   :  { %v2157_v3 = vpop.permute.xlu0 %2156 }
0x29b1   :  { %v2159_v4 = vmul.f32 %v3537_v57, %v2157_v3 }
0x29b3   :  { %2161 = vrot.lane.b32.xlu1 %v2159_v4, %s3613_s25 }
0x2a25   :  { %v2162_v5 = vpop.permute.xlu1 %2161 }
0x2a26   :  { %3309 = vmatmul.mubr.msk.f32.vlgmr.msra.gmra.mrb[28].mxu1 %vm258_vm7, %v2162_v5 }
0x2a27   :  { %3414 = vmatpush3.bf16.msra.mxu1 %v3724_v14  ;;  %3326 = vmatprep.mubr.msk.f32.mxu1 %vm3608_vm0, %v3609_v10 }
0x2a28   :  { %3329 = vmatprep.subr.mxu1 %v3609_v10 }
0x2af9   :  { %v2231_v7 = vpop.f32.mrb[28].mxu1 }
0x2afa   :  { %v2232_v8 = vadd.f32 %v3944_v1, %v2231_v7  ;;  %v3310_v35 = vpop.f32.mrb[29].mxu1 }
0x2afc   :  { %2236 = vst.msk [vmem:[#allocation3 + $0xc] sm:$0x7] %vm1151_vm10, %v2232_v8  ;;  %v2237_v15 = vsel %vm1151_vm10, %v2232_v8, -inf }
0x2afd   :  { %2238 = vmax.xlane.f32.xlu0 %v2237_v15 }
0x2b8a   :  { %v2239_v17 = vpop.xlane.xlu0 %2238 }
0x2b8b   :  { %vm2240_vm3 = vcmp.eq.f32.partialorder %v2232_v8, %v2239_v17 }
0x2b8c   :  { %v2241_v19 = vsel %vm2240_vm3, %v3728_v16, 32 }
0x2b8d   :  { %v2242_v20 = vsel %vm1151_vm10, %v2241_v19, 2147483647 }
0x2b8e   :  { %v2244_v21 = vshra.s32 %v2242_v20, 16  ;;  %v2243_v24 = vand.u32 65535, %v2242_v20 }
0x2b90   :  { %v2246_v22 = vcvt.s32.f32 %v2244_v21  ;;  %v2245_v26 = vcvt.s32.f32 %v2243_v24 }
0x2b92   :  { %2247 = vmin.xlane.f32.xlu1 %v2246_v22 }
0x2c1f   :  { %v2248_v25 = vpop.xlane.xlu1 %2247 }
0x2c20   :  { %vm2249_vm4 = vcmp.eq.f32.partialorder %v2246_v22, %v2248_v25  ;;  %v2254_v28 = vcvt.f32.s32 %v2248_v25 }
0x2c21   :  { %v2250_v27 = vsel %vm2249_vm4, %v2245_v26, inf }
0x2c22   :  { %2251 = vmin.xlane.f32.xlu0 %v2250_v27  ;;  %v2255_v30 = vshll.u32 %v2254_v28, 16 }
0x2caf   :  { %v2252_v29 = vpop.xlane.xlu0 %2251 }
0x2cb0   :  { %v2253_v18 = vcvt.f32.s32 %v2252_v29 }
0x2cb2   :  { %v2256_v31 = vadd.s32 %v2255_v30, %v2253_v18 }
0x2cb4   :  { %vm2257_vm6 = vcmp.eq.s32.totalorder %v2256_v31, %v3728_v16 }
0x2cb5   :  { %v3044_v32 = vsel %vm2257_vm6, 1.0, %v3609_v10 }
0x2cb6   :  { %3320 = vmatmul.mubr.msk.f32.vlgmr.msra.gmra.mrb[26].mxu0 %vm72_vm1, %v3044_v32 }
0x2cb7   :  { %3335 = vmatpush3.msra.mxu0 %v3928_v60  ;;  %3336 = vmatprep.mubr.msk.f32.mxu0 %vm3608_vm0, %v3609_v10 }
0x2cb8   :  { %3421 = vmatprep.subr.bf16.mxu0 %v3607_v9 }
0x2d89   :  { %v2329_v33 = vpop.f32.mrb[26].mxu0 }
0x2d8a   :  { %v3321_v36 = vpop.f32.mrb[27].mxu0  ;;  %3327 = vmatmul.mubr.msk.f32.vlgmr.msra.gmra.mrb[30].mxu1 %vm168_vm5, %v2329_v33 }
0x2d8b   :  { %3330 = vmatpush3.msra.mxu1 %v4040_v37  ;;  %3331 = vmatprep.mubr.msk.f32.mxu1 %vm3608_vm0, %v3609_v10 }
0x2d8c   :  { %3415 = vmatprep.subr.bf16.mxu1 %v3607_v9 }
0x2e5d   :  { %v2402_v38 = vpop.f32.mrb[30].mxu1 }
0x2e5e   :  { %v2403_v40 = vadd.f32 %v4049_v39, %v2402_v38  ;;  %v3328_v41 = vpop.f32.mrb[31].mxu1 }
0x2e60   :  { %3540 = vtanh.f32 %v2403_v40  ;;  %v3047_v43 = vmul.f32 -1.442695, %v2403_v40 }
0x2e62   :  { %3542 = vpow2.f32 %v3047_v43 }
0x2e6a   :  { %v3541_v42 = vpop.eup %3540 }
0x2e6b   :  { %2414 = vrot.lane.b32.xlu0 %v3541_v42, %s3610_s22 }
0x2e6c   :  { %v3543_v23 = vpop.eup %3542 }
0x2e6d   :  { %v2409_v44 = vadd.f32 1.0, %v3543_v23 }
0x2e6f   :  { %3544 = vrcp.f32 %v2409_v44 }
0x2e79   :  { %v3545_v45 = vpop.eup %3544 }
0x2edd   :  { %v2415_v34 = vpop.permute.xlu0 %2414 }
0x2ede   :  { %v2417_v46 = vmul.f32 %v3545_v45, %v2415_v34 }
0x2ee0   :  { %3546 = vtanh.f32 %v2417_v46 }
0x2eea   :  { %v3547_v47 = vpop.eup %3546 }
0x2eeb   :  { %2420 = vrot.lane.b32.xlu1 %v3547_v47, %s3614_s1 }
0x2f5d   :  { %v2421_v48 = vpop.permute.xlu1 %2420 }
0x2f5e   :  { %v2423_v50 = vmul.f32 %v3545_v45, %v2421_v48 }
0x2f60   :  { %2425 = vrot.lane.b32.xlu1 %v2423_v50, %s3613_s25 }
0x2f64   :  { %2508 = vrot.lane.b32.xlu1 %v2417_v46, %s3611_s23 }
0x2fd2   :  { %v2426_v51 = vpop.permute.xlu1 %2425 }
0x2fd3   :  { %3332 = vmatmul.mubr.msk.f32.vlgmr.msra.gmra.mrb[32].mxu1 %vm258_vm7, %v2426_v51 }
0x2fd4   :  { %3417 = vmatpush3.bf16.msra.mxu1 %v3698_v6  ;;  %3347 = vmatprep.mubr.msk.f32.mxu1 %vm3608_vm0, %v3609_v10 }
0x2fd5   :  { %3418 = vmatprep.subr.bf16.mxu1 %v3607_v9 }
0x2fd8   :  { %3420 = vmatpush3.bf16.msra.mxu1 %v3710_v11  ;;  %v2509_v11 = vpop.permute.xlu1 %2508 }
0x2fd9   :  { %3362 = vmatprep.subr.mxu1 %v3609_v10 }
0x30a6   :  { %v2495_v52 = vpop.f32.mrb[32].mxu1 }
0x30a7   :  { %v2499_v53 = vadd.f32 %v2495_v52, %v3920_v12  ;;  %v3333_v55 = vpop.f32.mrb[33].mxu1 }
0x30a9   :  { %3548 = vtanh.f32 %v2499_v53  ;;  %v3049_v57 = vmul.f32 -1.442695, %v2499_v53 }
0x30ab   :  { %3550 = vpow2.f32 %v3049_v57  ;;  %v1007_v57 = vand.u32 2147483647, %v3862_v49 }
0x30b3   :  { %v3549_v56 = vpop.eup %3548 }
0x30b4   :  { %2513 = vrot.lane.b32.xlu0 %v3549_v56, %s3610_s22 }
0x30b5   :  { %v3551_v6 = vpop.eup %3550 }
0x30b6   :  { %v2503_v58 = vadd.f32 1.0, %v3551_v6  ;;  %v1010_v6 = vsub.f32 0.0, %v1007_v57 }
0x30b8   :  { %3552 = vrcp.f32 %v2503_v58  ;;  %v1013_v58 = vmul.f32 1.442695, %v1010_v6 }
0x30c2   :  { %v3553_v59 = vpop.eup %3552 }
0x30c3   :  { %v2511_v62 = vmul.f32 %v3553_v59, %v2509_v11 }
0x3126   :  { %v2514_v61 = vpop.permute.xlu0 %2513 }
0x3127   :  { %v2516_v9 = vmul.f32 %v3553_v59, %v2514_v61 }
0x3129   :  { %2518 = vrot.lane.b32.xlu0 %v2516_v9, %s3611_s23 }
0x319b   :  { %v2519_v63 = vpop.permute.xlu0 %2518 }
0x319c   :  { %v2521_v0 = vadd.f32 %v2519_v63, %v2511_v62 }
0x319e   :  { %3554 = vtanh.f32 %v2521_v0 }
0x31a8   :  { %v3555_v2 = vpop.eup %3554 }
0x31a9   :  { %2524 = vrot.lane.b32.xlu1 %v3555_v2, %s3612_s24 }
0x321b   :  { %v2525_v3 = vpop.permute.xlu1 %2524 }
0x321c   :  { %v2527_v4 = vmul.f32 %v3553_v59, %v2525_v3 }
0x321e   :  { %2529 = vrot.lane.b32.xlu0 %v2527_v4, %s3613_s25 }
0x3290   :  { %v2530_v5 = vpop.permute.xlu0 %2529 }
0x3291   :  { %3337 = vmatmul.mubr.msk.f32.vlgmr.msra.gmra.mrb[28].mxu0 %vm258_vm7, %v2530_v5 }
0x3292   :  { %3423 = vmatpush3.bf16.msra.mxu0 %v3724_v14  ;;  %3354 = vmatprep.mubr.msk.f32.mxu0 %vm3608_vm0, %v3609_v10 }
0x3293   :  { %3357 = vmatprep.subr.mxu0 %v3609_v10 }
0x3364   :  { %v2599_v7 = vpop.f32.mrb[28].mxu0 }
0x3365   :  { %v2600_v8 = vadd.f32 %v3944_v1, %v2599_v7  ;;  %v3338_v35 = vpop.f32.mrb[29].mxu0 }
0x3366   :  { %v1004_v35 = vmax.f32 %v3862_v49, 0.0 }
0x3367   :  { %2604 = vst.msk [vmem:[#allocation3 + $0x10] sm:$0x7] %vm1151_vm10, %v2600_v8  ;;  %v2605_v15 = vsel %vm1151_vm10, %v2600_v8, -inf }
0x3368   :  { %2606 = vmax.xlane.f32.xlu1 %v2605_v15 }
0x33f5   :  { %v2607_v17 = vpop.xlane.xlu1 %2606 }
0x33f6   :  { %vm2608_vm8 = vcmp.eq.f32.partialorder %v2600_v8, %v2607_v17  ;;  %v1008_v17 = vand.u32 2147483647, %v3873_v54 }
0x33f7   :  { %v2609_v19 = vsel %vm2608_vm8, %v3728_v16, 32 }
0x33f8   :  { %v2610_v14 = vsel %vm1151_vm10, %v2609_v19, 2147483647  ;;  %v1011_v19 = vsub.f32 0.0, %v1008_v17 }
0x33f9   :  { %v2612_v20 = vshra.s32 %v2610_v14, 16  ;;  %v2611_v22 = vand.u32 65535, %v2610_v14 }
0x33fa   :  { %v1015_v14 = vmul.f32 1.442695, %v1011_v19 }
0x33fb   :  { %v2614_v21 = vcvt.s32.f32 %v2612_v20  ;;  %v2613_v25 = vcvt.s32.f32 %v2611_v22 }
0x33fd   :  { %2615 = vmin.xlane.f32.xlu0 %v2614_v21 }
0x348a   :  { %v2616_v24 = vpop.xlane.xlu0 %2615 }
0x348b   :  { %vm2617_vm9 = vcmp.eq.f32.partialorder %v2614_v21, %v2616_v24  ;;  %v2622_v27 = vcvt.f32.s32 %v2616_v24 }
0x348c   :  { %v2618_v26 = vsel %vm2617_vm9, %v2613_v25, inf }
0x348d   :  { %2619 = vmin.xlane.f32.xlu0 %v2618_v26  ;;  %v2623_v29 = vshll.u32 %v2622_v27, 16 }
0x351a   :  { %v2620_v28 = vpop.xlane.xlu0 %2619 }
0x351b   :  { %v2621_v30 = vcvt.f32.s32 %v2620_v28 }
0x351d   :  { %v2624_v18 = vadd.s32 %v2623_v29, %v2621_v30 }
0x351f   :  { %vm2625_vm11 = vcmp.eq.s32.totalorder %v2624_v18, %v3728_v16 }
0x3520   :  { %v3051_v31 = vsel %vm2625_vm11, 1.0, %v3609_v10 }
0x3521   :  { %3348 = vmatmul.mubr.msk.f32.vlgmr.msra.gmra.mrb[34].mxu1 %vm72_vm1, %v3051_v31 }
0x3522   :  { %3363 = vmatpush3.msra.mxu1 %v3928_v60  ;;  %3364 = vmatprep.mubr.msk.f32.mxu1 %vm3608_vm0, %v3609_v10 }
0x35f4   :  { %v2697_v32 = vpop.f32.mrb[34].mxu1 }
0x35f5   :  { %v3349_v33 = vpop.f32.mrb[35].mxu1  ;;  %3355 = vmatmul.mubr.msk.f32.vlgmr.msra.gmra.mrb[30].mxu0 %vm168_vm5, %v2697_v32 }
0x35f6   :  { %3358 = vmatpush3.msra.mxu0 %v4040_v37  ;;  %3359 = vmatprep.mubr.msk.f32.mxu0 %vm3608_vm0, %v3609_v10 }
0x36c8   :  { %v2770_v36 = vpop.f32.mrb[30].mxu0 }
0x36c9   :  { %v2771_v16 = vadd.f32 %v4049_v39, %v2770_v36  ;;  %v3356_v38 = vpop.f32.mrb[31].mxu0 }
0x36cb   :  { %3556 = vtanh.f32 %v2771_v16  ;;  %v3054_v60 = vmul.f32 -1.442695, %v2771_v16 }
0x36cd   :  { %3558 = vpow2.f32 %v3054_v60 }
0x36d5   :  { %v3557_v40 = vpop.eup %3556 }
0x36d6   :  { %2782 = vrot.lane.b32.xlu1 %v3557_v40, %s3610_s22 }
0x36d7   :  { %v3559_v41 = vpop.eup %3558 }
0x36d8   :  { %v2777_v42 = vadd.f32 1.0, %v3559_v41 }
0x36da   :  { %3560 = vrcp.f32 %v2777_v42 }
0x36e4   :  { %v3561_v43 = vpop.eup %3560 }
0x3748   :  { %v2783_v23 = vpop.permute.xlu1 %2782 }
0x3749   :  { %v2785_v44 = vmul.f32 %v3561_v43, %v2783_v23 }
0x374b   :  { %3562 = vtanh.f32 %v2785_v44 }
0x3755   :  { %v3563_v37 = vpop.eup %3562 }
0x3756   :  { %2788 = vrot.lane.b32.xlu0 %v3563_v37, %s3614_s1 }
0x375a   :  { %2876 = vrot.lane.b32.xlu0 %v2785_v44, %s3611_s23 }
0x37c8   :  { %v2789_v10 = vpop.permute.xlu0 %2788 }
0x37c9   :  { %v2791_v39 = vmul.f32 %v3561_v43, %v2789_v10 }
0x37cb   :  { %2793 = vrot.lane.b32.xlu1 %v2791_v39, %s3613_s25 }
0x37cc   :  { %v2877_v61 = vpop.permute.xlu0 %2876 }
0x383d   :  { %v2794_v45 = vpop.permute.xlu1 %2793 }
0x383e   :  { %3360 = vmatmul.mubr.msk.f32.vlgmr.msra.gmra.mrb[32].mxu0 %vm258_vm7, %v2794_v45 }
0x3911   :  { %v2863_v34 = vpop.f32.mrb[32].mxu0 }
0x3912   :  { %v2867_v46 = vadd.f32 %v2863_v34, %v3920_v12  ;;  %v3361_v47 = vpop.f32.mrb[33].mxu0 }
0x3914   :  { %3564 = vtanh.f32 %v2867_v46  ;;  %v3056_v50 = vmul.f32 -1.442695, %v2867_v46 }
0x3916   :  { %3566 = vpow2.f32 %v3056_v50 }
0x391e   :  { %v3565_v48 = vpop.eup %3564 }
0x391f   :  { %2881 = vrot.lane.b32.xlu1 %v3565_v48, %s3610_s22 }
0x3920   :  { %v3567_v51 = vpop.eup %3566 }
0x3921   :  { %v2871_v52 = vadd.f32 1.0, %v3567_v51 }
0x3923   :  { %3568 = vrcp.f32 %v2871_v52 }
0x3924   :  { %3570 = vpow2.f32 %v1013_v58 }
0x392d   :  { %v3569_v53 = vpop.eup %3568 }
0x392e   :  { %v3571_v12 = vpop.eup %3570  ;;  %v2879_v9 = vmul.f32 %v3569_v53, %v2877_v61 }
0x392f   :  { %v1019_v59 = vadd.f32 1.0, %v3571_v12  ;;  %v1022_v63 = vmul.f32 -0.5, %v3571_v12  ;;  %v1025_v3 = vand.u32 2147483647, %v3571_v12 }
0x3931   :  { %3572 = vlog2.f32 %v1019_v59  ;;  %v1023_v2 = vadd.f32 1.0, %v1022_v63  ;;  %vm1026_vm0 = vcmp.lt.f32.partialorder %v1025_v3, 0.0004427343 }
0x3933   :  { %v1024_v5 = vmul.f32 %v3571_v12, %v1023_v2 }
0x393b   :  { %v3573_v0 = vpop.eup %3572 }
0x393c   :  { %v1021_v4 = vmul.f32 0.6931472, %v3573_v0 }
0x393e   :  { %v1027_v8 = vsel %vm1026_vm0, %v1024_v5, %v1021_v4 }
0x393f   :  { %v1046_v15 = vadd.f32 %v1027_v8, %v1004_v35 }
0x3991   :  { %v2882_v55 = vpop.permute.xlu1 %2881 }
0x3992   :  { %v2884_v56 = vmul.f32 %v3569_v53, %v2882_v55 }
0x3994   :  { %2886 = vrot.lane.b32.xlu1 %v2884_v56, %s3611_s23 }
0x3a06   :  { %v2887_v11 = vpop.permute.xlu1 %2886 }
0x3a07   :  { %v2889_v62 = vadd.f32 %v2887_v11, %v2879_v9 }
0x3a09   :  { %3574 = vtanh.f32 %v2889_v62 }
0x3a0a   :  { %3576 = vpow2.f32 %v1015_v14 }
0x3a13   :  { %v3575_v7 = vpop.eup %3574 }
0x3a14   :  { %2892 = vrot.lane.b32.xlu0 %v3575_v7, %s3612_s24  ;;  %v3577_v20 = vpop.eup %3576 }
0x3a15   :  { %v1028_v21 = vadd.f32 1.0, %v3577_v20  ;;  %v1031_v22 = vmul.f32 -0.5, %v3577_v20  ;;  %v1034_v49 = vand.u32 2147483647, %v3577_v20 }
0x3a17   :  { %3578 = vlog2.f32 %v1028_v21  ;;  %v1032_v25 = vadd.f32 1.0, %v1031_v22  ;;  %vm1035_vm1 = vcmp.lt.f32.partialorder %v1034_v49, 0.0004427343 }
0x3a18   :  { %1065 = vrot.lane.b32.xlu0 %v1046_v15, %s3610_s22 }
0x3a19   :  { %v1033_v28 = vmul.f32 %v3577_v20, %v1032_v25 }
0x3a1c   :  { %1069 = vrot.lane.b32.xlu0 %v3884_v13, %s3610_s22  ;;  %v1005_v13 = vmax.f32 %v3873_v54, 0.0 }
0x3a21   :  { %v3579_v24 = vpop.eup %3578 }
0x3a22   :  { %v1030_v26 = vmul.f32 0.6931472, %v3579_v24 }
0x3a24   :  { %v1036_v30 = vsel %vm1035_vm1, %v1033_v28, %v1030_v26 }
0x3a25   :  { %v1047_v31 = vadd.f32 %v1036_v30, %v1005_v13 }
0x3a86   :  { %v2893_v27 = vpop.permute.xlu0 %2892 }
0x3a87   :  { %v2895_v29 = vmul.f32 %v3569_v53, %v2893_v27 }
0x3a89   :  { %2897 = vrot.lane.b32.xlu1 %v2895_v29, %s3613_s25  ;;  %s3615_s25 = smov [#allocation3]  }
0x3a8a   :  { %v1066_v18 = vpop.permute.xlu0 %1065  ;;  %s2978_s26 = sshll.u32 %s3615_s25, 4  ;;  %s2979_s26 = int_to_ptr.vmem [resolvable:$true] %s2978_s26 }
0x3a8b   :  { %1074 = vst.msk [vmem:[%s4146_s12] sm:$0xff] %vm168_vm5, %v1066_v18  ;;  %p3587_p1 = scmp.lt.s32.totalorder %s2979_s26, %s2979_s26 }
0x3a8d   :  { %1067 = vrot.lane.b32.xlu1 %v1047_v31, %s3610_s22  ;;  %s3582_s22 = scalar_lea.vmem %s2979_s26, 384 }
0x3a8e   :  { %v1070_v32 = vpop.permute.xlu0 %1069  ;;  %p3583_p0 = scmp.ne.s32.totalorder %s2979_s26, %s3582_s22  ;;  %p3588_p2 = scmp.lt.s32.totalorder %s3582_s22, %s3582_s22 }
0x3a8f   :  { %1076 = vst.msk [vmem:[%s4146_s12 + $0x10] sm:$0xff] %vm168_vm5, %v1070_v32 }
0x3a90   :  { %p3589_p3 = por %p3588_p2, %p3587_p1 }
0x3a92   :  { %p3590_p4 = pnand %p3589_p3, %p3583_p0 }
0x3afb   :  { %v2898_v33 = vpop.permute.xlu1 %2897 }
0x3afc   :  { %3365 = vmatmul.mubr.msk.f32.vlgmr.msra.gmra.mrb[36].mxu1 %vm258_vm7, %v2898_v33 }
0x3aff   :  { %v1068_v54 = vpop.permute.xlu1 %1067 }
0x3b00   :  { %1075 = vst.msk [vmem:[%s4146_s12 + $0x8] sm:$0xff] %vm168_vm5, %v1068_v54 }
0x3bcf   :  { %v2967_v36 = vpop.f32.mrb[36].mxu1 }
0x3bd0   :  { %v2968_v16 = vadd.f32 %v3944_v1, %v2967_v36  ;;  %v3366_v38 = vpop.f32.mrb[37].mxu1 }
0x3bd2   :  { %2972 = vst.msk [vmem:[#allocation3 + $0x14] sm:$0x7] %vm1151_vm10, %v2968_v16 }
0x3bd3   :  { %3593 = shalt.err (!%p3590_p4)
}
0x3bd4   :  { %s3594_s12 = scalar_lea.hbm %s4144_s10, 384 }
0x3bd5   :  { %p3595_p5 = scmp.ne.s32.totalorder %s4144_s10, %s3594_s12  ;;  %p3598_p6 = scmp.lt.u32.totalorder %s3594_s12, %s4144_s10 }
0x3bd7   :  { %p3600_p7 = pnand %p3598_p6, %p3595_p5 }
0x3bd9   :  { %3603 = shalt.err (!%p3600_p7)
}
0x3bda   :  { %s3616_s13 = smov 64   ;;  %s3617_s14 = smov 4  }
0x3bdb   :  { %2984 = dma.vmem_to_hbm [thread:$0]  %s2979_s26, 384, %s4144_s10, [#allocation4], %s3616_s13, %s3616_s13, %s3617_s14  }
0x3bdc   :  { %3604 = dma.done.wait [#allocation4], 384  }
0x3bdd   :  { %3605 = vsyncadd [#allocation4], 4294966912 }
0x3bde   :  { %2996 = vsyncpa [#allocation4], 1 }

</bundles_post_ra>
